<compile_context>
chip_gen: v7x
topology: tpu7x:2x2x1
jax: 0.10.0
libtpu: 0.0.40
codegen_flags: <defaults>
</compile_context>

<pallas_src>
import jax
import jax.numpy as jnp
from jax.experimental import pallas as pl
from jax.experimental.pallas import tpu as pltpu


INPUT_SIZE = 896
OUTPUT_SIZE = 4672
HIDDEN = (128, 128, 128, 64)
_DIMS = (INPUT_SIZE,) + HIDDEN + (OUTPUT_SIZE,)


def _mlp_kernel(x_ref,
                w1_ref, b1_ref,
                w2_ref, b2_ref,
                w3_ref, b3_ref,
                w4_ref, b4_ref,
                w5_ref, b5_ref,
                o_ref):
    """Fused 5-layer MLP on one (TILE_B, 896) batch tile.

    MXU operands are bf16 (weights stored bf16, activations cast in-kernel),
    accumulation and bias-add are f32, logits stored as f32.
    """
    h = x_ref[...].astype(jnp.bfloat16)

    h = jnp.dot(h, w1_ref[...], preferred_element_type=jnp.float32) + b1_ref[...]
    h = jnp.maximum(h, 0.0).astype(jnp.bfloat16)

    h = jnp.dot(h, w2_ref[...], preferred_element_type=jnp.float32) + b2_ref[...]
    h = jnp.maximum(h, 0.0).astype(jnp.bfloat16)

    h = jnp.dot(h, w3_ref[...], preferred_element_type=jnp.float32) + b3_ref[...]
    h = jnp.maximum(h, 0.0).astype(jnp.bfloat16)

    h = jnp.dot(h, w4_ref[...], preferred_element_type=jnp.float32) + b4_ref[...]
    h = jnp.maximum(h, 0.0).astype(jnp.bfloat16)

    o_ref[...] = (jnp.dot(h, w5_ref[...], preferred_element_type=jnp.float32)
                  + b5_ref[...])


def init_params(key):
    """PyTorch-style init U(-1/sqrt(fan_in), 1/sqrt(fan_in)).

    Weights are stored (in, out) in bf16 (MXU-native); biases (1, out) in f32.
    """
    params = []
    for i in range(len(_DIMS) - 1):
        fan_in, fan_out = _DIMS[i], _DIMS[i + 1]
        key, kw, kb = jax.random.split(key, 3)
        bound = 1.0 / (fan_in ** 0.5)
        w = jax.random.uniform(kw, (fan_in, fan_out), jnp.float32, -bound, bound)
        b = jax.random.uniform(kb, (1, fan_out), jnp.float32, -bound, bound)
        params.append((w.astype(jnp.bfloat16), b))
    return params


def model_forward(x, params, *, tile_b=256):
    """Matches Model.forward: flatten to (B, 896), run the fused MLP."""
    B = x.shape[0]
    x = x.reshape(B, -1)
    assert x.shape[1] == INPUT_SIZE, f"expected {INPUT_SIZE} flattened features"

    # Batch tile: 256 fills the MXU M dim on v6e/v7x; tiny batches round up to
    # a sublane multiple (8) to satisfy the (8, 128) block constraint.
    TILE_B = tile_b if B >= tile_b else max(8, -(-B // 8) * 8)
    B_pad = -(-B // TILE_B) * TILE_B
    if B_pad != B:
        x = jnp.pad(x, ((0, B_pad - B), (0, 0)))

    flat_params = []
    for w, b in params:
        flat_params.extend([w, b])

    def _resident(shape):
        # Full-array block, constant block index -> DMA'd once, stays in VMEM.
        return pl.BlockSpec(shape, lambda i: (0, 0))

    in_specs = [pl.BlockSpec((TILE_B, INPUT_SIZE), lambda i: (i, 0))]
    for w, b in params:
        in_specs.append(_resident(w.shape))
        in_specs.append(_resident(b.shape))

    flops_per_row = 2 * sum(_DIMS[i] * _DIMS[i + 1] for i in range(len(_DIMS) - 1))
    weight_bytes = sum(int(w.size) * w.dtype.itemsize + int(b.size) * b.dtype.itemsize
                       for w, b in params)
    cost = pl.CostEstimate(
        flops=flops_per_row * B_pad,
        transcendentals=0,
        bytes_accessed=B_pad * (INPUT_SIZE * x.dtype.itemsize + OUTPUT_SIZE * 4)
                       + weight_bytes,
    )

    out = pl.pallas_call(
        _mlp_kernel,
        out_shape=jax.ShapeDtypeStruct((B_pad, OUTPUT_SIZE), jnp.float32),
        grid=(B_pad // TILE_B,),
        in_specs=in_specs,
        out_specs=pl.BlockSpec((TILE_B, OUTPUT_SIZE), lambda i: (i, 0)),
        compiler_params=pltpu.CompilerParams(
            dimension_semantics=("parallel",),   # megacore on v7x
            vmem_limit_bytes=32 << 20,           # weights + double-buffered tiles
        ),
        cost_estimate=cost,
    )(x, *flat_params)

    return out[:B] if B_pad != B else out


def reference_forward(x, params):
    """Pure-JAX reference mirroring the kernel math (bf16 MXU inputs, f32 acc)."""
    h = x.reshape(x.shape[0], -1).astype(jnp.bfloat16)
    for i, (w, b) in enumerate(params):
        h = jnp.dot(h, w, preferred_element_type=jnp.float32) + b
        if i < len(params) - 1:
            h = jnp.maximum(h, 0.0).astype(jnp.bfloat16)
    return h


if __name__ == "__main__":
    key = jax.random.PRNGKey(0)
    kp, kx = jax.random.split(key)

    params = init_params(kp)
    # 14 planes x 64 squares == 896 flattened features (the encoded chess board
    # that Model.forward reshapes to (B, -1)).
    x = jax.random.normal(kx, (2, 14, 64), jnp.float32)

    out = model_forward(x, params)
    out = jax.block_until_ready(out)

    ref = reference_forward(x, params)
    assert out.shape == (2, OUTPUT_SIZE), out.shape
    assert jnp.allclose(out, ref, atol=1e-2, rtol=1e-2), "mismatch vs reference"

    # TODO(synk): `predict()` (softmax + python-chess legal-move decoding) is
    # host-side game logic, not part of the tensor forward pass; not ported.
    print("KERNEL_OK")
</pallas_src>

<mosaic_0001>
module attributes {stable_mosaic.version = 11 : i64} {
  func.func @_mlp_kernel(%arg0: i32, %arg1: memref<8x896xf32, #tpu.memory_space<vmem>>, %arg2: memref<896x128xbf16, #tpu.memory_space<vmem>>, %arg3: memref<1x128xf32, #tpu.memory_space<vmem>>, %arg4: memref<128x128xbf16, #tpu.memory_space<vmem>>, %arg5: memref<1x128xf32, #tpu.memory_space<vmem>>, %arg6: memref<128x128xbf16, #tpu.memory_space<vmem>>, %arg7: memref<1x128xf32, #tpu.memory_space<vmem>>, %arg8: memref<128x64xbf16, #tpu.memory_space<vmem>>, %arg9: memref<1x64xf32, #tpu.memory_space<vmem>>, %arg10: memref<64x4672xbf16, #tpu.memory_space<vmem>>, %arg11: memref<1x4672xf32, #tpu.memory_space<vmem>>, %arg12: memref<8x4672xf32, #tpu.memory_space<vmem>>) attributes {dimension_semantics = [#tpu.dimension_semantics<parallel>], iteration_bounds = array<i64: 1>, scalar_prefetch = 0 : i64, scratch_operands = 0 : i64, tpu.core_type = #tpu.core_type<tc>, window_params = [{transform_indices = @transform_0, window_bounds = array<i64: 8, 896>}, {pipeline_mode = #tpu.pipeline_mode<synchronous>, transform_indices = @transform_1, window_bounds = array<i64: 896, 128>}, {pipeline_mode = #tpu.pipeline_mode<synchronous>, transform_indices = @transform_2, window_bounds = array<i64: 1, 128>}, {pipeline_mode = #tpu.pipeline_mode<synchronous>, transform_indices = @transform_3, window_bounds = array<i64: 128, 128>}, {pipeline_mode = #tpu.pipeline_mode<synchronous>, transform_indices = @transform_4, window_bounds = array<i64: 1, 128>}, {pipeline_mode = #tpu.pipeline_mode<synchronous>, transform_indices = @transform_5, window_bounds = array<i64: 128, 128>}, {pipeline_mode = #tpu.pipeline_mode<synchronous>, transform_indices = @transform_6, window_bounds = array<i64: 1, 128>}, {pipeline_mode = #tpu.pipeline_mode<synchronous>, transform_indices = @transform_7, window_bounds = array<i64: 128, 64>}, {pipeline_mode = #tpu.pipeline_mode<synchronous>, transform_indices = @transform_8, window_bounds = array<i64: 1, 64>}, {pipeline_mode = #tpu.pipeline_mode<synchronous>, transform_indices = @transform_9, window_bounds = array<i64: 64, 4672>}, {pipeline_mode = #tpu.pipeline_mode<synchronous>, transform_indices = @transform_10, window_bounds = array<i64: 1, 4672>}, {transform_indices = @transform_11, window_bounds = array<i64: 8, 4672>}]} {
    %c0 = arith.constant 0 : index
    %c0_0 = arith.constant 0 : index
    %0 = vector.load %arg1[%c0, %c0_0] : memref<8x896xf32, #tpu.memory_space<vmem>>, vector<8x896xf32>
    %1 = arith.truncf %0 : vector<8x896xf32> to vector<8x896xbf16>
    %c0_1 = arith.constant 0 : index
    %c0_2 = arith.constant 0 : index
    %2 = vector.load %arg2[%c0_1, %c0_2] : memref<896x128xbf16, #tpu.memory_space<vmem>>, vector<896x128xbf16>
    %cst = arith.constant dense<0.000000e+00> : vector<8x128xf32>
    %3 = tpu.matmul %1, %2, %cst {dimension_numbers = #tpu.dot_dimension_numbers<[1], [0], [0], [1], [0, 0, 1, 1], [], []>} : vector<8x896xbf16>, vector<896x128xbf16>, vector<8x128xf32> -> vector<8x128xf32>
    %c0_3 = arith.constant 0 : index
    %c0_4 = arith.constant 0 : index
    %4 = vector.load %arg3[%c0_3, %c0_4] : memref<1x128xf32, #tpu.memory_space<vmem>>, vector<1x128xf32>
    %5 = vector.broadcast %4 : vector<1x128xf32> to vector<8x128xf32>
    %6 = arith.addf %3, %5 : vector<8x128xf32>
    %cst_5 = arith.constant 0.000000e+00 : f32
    %7 = vector.broadcast %cst_5 : f32 to vector<8x128xf32>
    %8 = arith.maximumf %6, %7 : vector<8x128xf32>
    %9 = arith.truncf %8 : vector<8x128xf32> to vector<8x128xbf16>
    %c0_6 = arith.constant 0 : index
    %c0_7 = arith.constant 0 : index
    %10 = vector.load %arg4[%c0_6, %c0_7] : memref<128x128xbf16, #tpu.memory_space<vmem>>, vector<128x128xbf16>
    %cst_8 = arith.constant dense<0.000000e+00> : vector<8x128xf32>
    %11 = tpu.matmul %9, %10, %cst_8 {dimension_numbers = #tpu.dot_dimension_numbers<[1], [0], [0], [1], [0, 0, 1, 1], [], []>} : vector<8x128xbf16>, vector<128x128xbf16>, vector<8x128xf32> -> vector<8x128xf32>
    %c0_9 = arith.constant 0 : index
    %c0_10 = arith.constant 0 : index
    %12 = vector.load %arg5[%c0_9, %c0_10] : memref<1x128xf32, #tpu.memory_space<vmem>>, vector<1x128xf32>
    %13 = vector.broadcast %12 : vector<1x128xf32> to vector<8x128xf32>
    %14 = arith.addf %11, %13 : vector<8x128xf32>
    %cst_11 = arith.constant 0.000000e+00 : f32
    %15 = vector.broadcast %cst_11 : f32 to vector<8x128xf32>
    %16 = arith.maximumf %14, %15 : vector<8x128xf32>
    %17 = arith.truncf %16 : vector<8x128xf32> to vector<8x128xbf16>
    %c0_12 = arith.constant 0 : index
    %c0_13 = arith.constant 0 : index
    %18 = vector.load %arg6[%c0_12, %c0_13] : memref<128x128xbf16, #tpu.memory_space<vmem>>, vector<128x128xbf16>
    %cst_14 = arith.constant dense<0.000000e+00> : vector<8x128xf32>
    %19 = tpu.matmul %17, %18, %cst_14 {dimension_numbers = #tpu.dot_dimension_numbers<[1], [0], [0], [1], [0, 0, 1, 1], [], []>} : vector<8x128xbf16>, vector<128x128xbf16>, vector<8x128xf32> -> vector<8x128xf32>
    %c0_15 = arith.constant 0 : index
    %c0_16 = arith.constant 0 : index
    %20 = vector.load %arg7[%c0_15, %c0_16] : memref<1x128xf32, #tpu.memory_space<vmem>>, vector<1x128xf32>
    %21 = vector.broadcast %20 : vector<1x128xf32> to vector<8x128xf32>
    %22 = arith.addf %19, %21 : vector<8x128xf32>
    %cst_17 = arith.constant 0.000000e+00 : f32
    %23 = vector.broadcast %cst_17 : f32 to vector<8x128xf32>
    %24 = arith.maximumf %22, %23 : vector<8x128xf32>
    %25 = arith.truncf %24 : vector<8x128xf32> to vector<8x128xbf16>
    %c0_18 = arith.constant 0 : index
    %c0_19 = arith.constant 0 : index
    %26 = vector.load %arg8[%c0_18, %c0_19] : memref<128x64xbf16, #tpu.memory_space<vmem>>, vector<128x64xbf16>
    %cst_20 = arith.constant dense<0.000000e+00> : vector<8x64xf32>
    %27 = tpu.matmul %25, %26, %cst_20 {dimension_numbers = #tpu.dot_dimension_numbers<[1], [0], [0], [1], [0, 0, 1, 1], [], []>} : vector<8x128xbf16>, vector<128x64xbf16>, vector<8x64xf32> -> vector<8x64xf32>
    %c0_21 = arith.constant 0 : index
    %c0_22 = arith.constant 0 : index
    %28 = vector.load %arg9[%c0_21, %c0_22] : memref<1x64xf32, #tpu.memory_space<vmem>>, vector<1x64xf32>
    %29 = vector.broadcast %28 : vector<1x64xf32> to vector<8x64xf32>
    %30 = arith.addf %27, %29 : vector<8x64xf32>
    %cst_23 = arith.constant 0.000000e+00 : f32
    %31 = vector.broadcast %cst_23 : f32 to vector<8x64xf32>
    %32 = arith.maximumf %30, %31 : vector<8x64xf32>
    %33 = arith.truncf %32 : vector<8x64xf32> to vector<8x64xbf16>
    %c0_24 = arith.constant 0 : index
    %c0_25 = arith.constant 0 : index
    %34 = vector.load %arg10[%c0_24, %c0_25] : memref<64x4672xbf16, #tpu.memory_space<vmem>>, vector<64x4672xbf16>
    %cst_26 = arith.constant dense<0.000000e+00> : vector<8x4672xf32>
    %35 = tpu.matmul %33, %34, %cst_26 {dimension_numbers = #tpu.dot_dimension_numbers<[1], [0], [0], [1], [0, 0, 1, 1], [], []>} : vector<8x64xbf16>, vector<64x4672xbf16>, vector<8x4672xf32> -> vector<8x4672xf32>
    %c0_27 = arith.constant 0 : index
    %c0_28 = arith.constant 0 : index
    %36 = vector.load %arg11[%c0_27, %c0_28] : memref<1x4672xf32, #tpu.memory_space<vmem>>, vector<1x4672xf32>
    %37 = vector.broadcast %36 : vector<1x4672xf32> to vector<8x4672xf32>
    %38 = arith.addf %35, %37 : vector<8x4672xf32>
    %c0_29 = arith.constant 0 : index
    %c0_30 = arith.constant 0 : index
    %39 = vector.load %arg12[%c0_29, %c0_30] : memref<8x4672xf32, #tpu.memory_space<vmem>>, vector<8x4672xf32>
    tpu.vector_store %arg12[%c0_29, %c0_30], %38 {strides = array<i32>} : memref<8x4672xf32, #tpu.memory_space<vmem>>, vector<8x4672xf32>,
    return
  }
  func.func @transform_0(%arg0: i32) -> (i32, i32) {
    %c0_i32 = arith.constant 0 : i32
    %c0_i32_0 = arith.constant 0 : i32
    return %arg0, %c0_i32 : i32, i32
  }
  func.func @transform_1(%arg0: i32) -> (i32, i32) {
    %c0_i32 = arith.constant 0 : i32
    %c0_i32_0 = arith.constant 0 : i32
    %c0_i32_1 = arith.constant 0 : i32
    return %c0_i32, %c0_i32_0 : i32, i32
  }
  func.func @transform_2(%arg0: i32) -> (i32, i32) {
    %c0_i32 = arith.constant 0 : i32
    %c0_i32_0 = arith.constant 0 : i32
    %c0_i32_1 = arith.constant 0 : i32
    return %c0_i32, %c0_i32_0 : i32, i32
  }
  func.func @transform_3(%arg0: i32) -> (i32, i32) {
    %c0_i32 = arith.constant 0 : i32
    %c0_i32_0 = arith.constant 0 : i32
    %c0_i32_1 = arith.constant 0 : i32
    return %c0_i32, %c0_i32_0 : i32, i32
  }
  func.func @transform_4(%arg0: i32) -> (i32, i32) {
    %c0_i32 = arith.constant 0 : i32
    %c0_i32_0 = arith.constant 0 : i32
    %c0_i32_1 = arith.constant 0 : i32
    return %c0_i32, %c0_i32_0 : i32, i32
  }
  func.func @transform_5(%arg0: i32) -> (i32, i32) {
    %c0_i32 = arith.constant 0 : i32
    %c0_i32_0 = arith.constant 0 : i32
    %c0_i32_1 = arith.constant 0 : i32
    return %c0_i32, %c0_i32_0 : i32, i32
  }
  func.func @transform_6(%arg0: i32) -> (i32, i32) {
    %c0_i32 = arith.constant 0 : i32
    %c0_i32_0 = arith.constant 0 : i32
    %c0_i32_1 = arith.constant 0 : i32
    return %c0_i32, %c0_i32_0 : i32, i32
  }
  func.func @transform_7(%arg0: i32) -> (i32, i32) {
    %c0_i32 = arith.constant 0 : i32
    %c0_i32_0 = arith.constant 0 : i32
    %c0_i32_1 = arith.constant 0 : i32
    return %c0_i32, %c0_i32_0 : i32, i32
  }
  func.func @transform_8(%arg0: i32) -> (i32, i32) {
    %c0_i32 = arith.constant 0 : i32
    %c0_i32_0 = arith.constant 0 : i32
    %c0_i32_1 = arith.constant 0 : i32
    return %c0_i32, %c0_i32_0 : i32, i32
  }
  func.func @transform_9(%arg0: i32) -> (i32, i32) {
    %c0_i32 = arith.constant 0 : i32
    %c0_i32_0 = arith.constant 0 : i32
    %c0_i32_1 = arith.constant 0 : i32
    return %c0_i32, %c0_i32_0 : i32, i32
  }
  func.func @transform_10(%arg0: i32) -> (i32, i32) {
    %c0_i32 = arith.constant 0 : i32
    %c0_i32_0 = arith.constant 0 : i32
    %c0_i32_1 = arith.constant 0 : i32
    return %c0_i32, %c0_i32_0 : i32, i32
  }
  func.func @transform_11(%arg0: i32) -> (i32, i32) {
    %c0_i32 = arith.constant 0 : i32
    %c0_i32_0 = arith.constant 0 : i32
    return %arg0, %c0_i32 : i32, i32
  }
}

</mosaic_0001>

<bundles_post_ra>
// kernel: tpu_custom_call.1
= control target key start
LH: loop header
LB: loop body
LE: loop exit
PB: predicated region body
PF: predicated region fallthrough
CT: control target
= control target key end

     0   :  { %16 = vsyncpa [#allocation3], 0  ;;  %s4271_s0 = inlined_call_operand.hbm [shape: f32[8,896], index: 0, kind: input, shape index: {}]   ;;  %s4272_s1 = inlined_call_operand.hbm [shape: bf16[896,128], index: 1, kind: input, shape index: {}]   ;;  %s4273_s2 = inlined_call_operand.vmem [shape: f32[1,128], index: 2, kind: input, shape index: {}]   ;;  %s4274_s3 = inlined_call_operand.vmem [shape: bf16[128,128], index: 3, kind: input, shape index: {}]   ;;  %s4275_s4 = inlined_call_operand.vmem [shape: f32[1,128], index: 4, kind: input, shape index: {}]   ;;  %s4276_s5 = inlined_call_operand.hbm [shape: bf16[128,128], index: 5, kind: input, shape index: {}]   ;;  %s4277_s6 = inlined_call_operand.vmem [shape: f32[1,128], index: 6, kind: input, shape index: {}]   ;;  %s4278_s7 = inlined_call_operand.vmem [shape: bf16[128,64], index: 7, kind: input, shape index: {}]   ;;  %s4279_s8 = inlined_call_operand.vmem [shape: f32[1,64], index: 8, kind: input, shape index: {}]   ;;  %s4280_s9 = inlined_call_operand.hbm [shape: bf16[64,4672], index: 9, kind: input, shape index: {}]   ;;  %s4281_s10 = inlined_call_operand.vmem [shape: f32[1,4672], index: 10, kind: input, shape index: {}]   ;;  %s4282_s11 = inlined_call_operand.hbm [shape: f32[8,4672], index: 11, kind: output, shape index: {}]  }
   0x1   :  { %17 = vsyncpa [#allocation6], 0 }
   0x2   :  { %18 = vsyncpa [#allocation9], 0 }
   0x3   :  { %19 = vsyncpa [#allocation4], 0  ;;  %s3870_s17 = smov [#allocation5]   ;;  %s3752_s21 = scalar_lea.hbm %s4272_s1, 7168 }
   0x4   :  { %s35_s18 = sshll.u32 %s3870_s17, 4  ;;  %p3753_p0 = scmp.ne.s32.totalorder %s4272_s1, %s3752_s21  ;;  %s36_s18 = int_to_ptr.vmem [resolvable:$true] %s35_s18 }
   0x5   :  { %p3756_p1 = scmp.lt.u32.totalorder %s3752_s21, %s4272_s1 }
   0x7   :  { %p3758_p2 = pnand %p3756_p1, %p3753_p0 }
   0x9   :  { %3761 = shalt.err (!%p3758_p2)
}
   0xa   :  { %s3762_s26 = scalar_lea.vmem %s36_s18, 7168  ;;  %p3767_p4 = scmp.lt.s32.totalorder %s36_s18, %s36_s18 }
   0xb   :  { %p3763_p3 = scmp.ne.s32.totalorder %s36_s18, %s3762_s26  ;;  %p3768_p5 = scmp.lt.s32.totalorder %s3762_s26, %s3762_s26 }
   0xd   :  { %p3769_p6 = por %p3768_p5, %p3767_p4 }
   0xf   :  { %p3770_p7 = pnand %p3769_p6, %p3763_p3 }
  0x11   :  { %3773 = shalt.err (!%p3770_p7)
}
  0x12   :  { %s3871_s27 = smov 64   ;;  %s3872_s28 = smov 4  }
  0x13   :  { %41 = dma.hbm_to_vmem [thread:$0]  %s4272_s1, 7168, %s36_s18, [#allocation6], %s3871_s27, %s3871_s27, %s3872_s28  }
  0x14   :  { %s3873_s12 = smov [#allocation2]   ;;  %s3874_s14 = smov [#allocation7]  }
  0x15   :  { %s26_s13 = sshll.u32 %s3873_s12, 4  ;;  %s53_s15 = sshll.u32 %s3874_s14, 4  ;;  %s27_s13 = int_to_ptr.vmem [resolvable:$true] %s26_s13  ;;  %s54_s15 = int_to_ptr.vmem [resolvable:$true] %s53_s15 }
  0x16   :  { %s3774_s19 = scalar_lea.hbm %s4271_s0, 896 }
  0x17   :  { %p3775_p8 = scmp.ne.s32.totalorder %s4271_s0, %s3774_s19  ;;  %p3778_p9 = scmp.lt.u32.totalorder %s3774_s19, %s4271_s0 }
  0x19   :  { %p3780_p10 = pnand %p3778_p9, %p3775_p8 }
  0x1b   :  { %3783 = shalt.err (!%p3780_p10)
}
  0x1c   :  { %s3784_s1 = scalar_lea.vmem %s27_s13, 896  ;;  %p3789_p12 = scmp.lt.s32.totalorder %s27_s13, %s27_s13 }
  0x1d   :  { %p3785_p11 = scmp.ne.s32.totalorder %s27_s13, %s3784_s1  ;;  %p3790_p13 = scmp.lt.s32.totalorder %s3784_s1, %s3784_s1 }
  0x1f   :  { %p3791_p0 = por %p3790_p13, %p3789_p12 }
  0x21   :  { %p3792_p1 = pnand %p3791_p0, %p3785_p11 }
  0x23   :  { %3795 = shalt.err (!%p3792_p1)
}
  0x24   :  { %29 = dma.hbm_to_vmem [thread:$0]  %s4271_s0, 896, %s27_s13, [#allocation3]  }
  0x25   :  { %s3796_s29 = scalar_lea.hbm %s4276_s5, 1024 }
  0x26   :  { %p3797_p2 = scmp.ne.s32.totalorder %s4276_s5, %s3796_s29  ;;  %p3800_p3 = scmp.lt.u32.totalorder %s3796_s29, %s4276_s5 }
  0x28   :  { %p3802_p4 = pnand %p3800_p3, %p3797_p2 }
  0x2a   :  { %3805 = shalt.err (!%p3802_p4)
}
  0x2b   :  { %s3806_s17 = scalar_lea.vmem %s54_s15, 1024  ;;  %p3811_p6 = scmp.lt.s32.totalorder %s54_s15, %s54_s15 }
  0x2c   :  { %p3807_p5 = scmp.ne.s32.totalorder %s54_s15, %s3806_s17  ;;  %p3812_p7 = scmp.lt.s32.totalorder %s3806_s17, %s3806_s17 }
  0x2e   :  { %p3813_p8 = por %p3812_p7, %p3811_p6 }
  0x30   :  { %p3814_p9 = pnand %p3813_p8, %p3807_p5 }
  0x32   :  { %3817 = shalt.err (!%p3814_p9)
}
  0x33   :  { %59 = dma.hbm_to_vmem [thread:$0]  %s4276_s5, 1024, %s54_s15, [#allocation6], %s3871_s27, %s3871_s27, %s3872_s28  }
  0x34   :  { %s3875_s19 = smov [#allocation8]   ;;  %s3818_s23 = scalar_lea.hbm %s4280_s9, 18944 }
  0x35   :  { %s71_s20 = sshll.u32 %s3875_s19, 4  ;;  %p3819_p10 = scmp.ne.s32.totalorder %s4280_s9, %s3818_s23  ;;  %s72_s20 = int_to_ptr.vmem [resolvable:$true] %s71_s20 }
  0x36   :  { %p3822_p11 = scmp.lt.u32.totalorder %s3818_s23, %s4280_s9 }
  0x38   :  { %p3824_p12 = pnand %p3822_p11, %p3819_p10 }
  0x3a   :  { %3827 = shalt.err (!%p3824_p12)
}
  0x3b   :  { %s3828_s26 = scalar_lea.vmem %s72_s20, 18944  ;;  %p3833_p0 = scmp.lt.s32.totalorder %s72_s20, %s72_s20 }
  0x3c   :  { %p3829_p13 = scmp.ne.s32.totalorder %s72_s20, %s3828_s26  ;;  %p3834_p1 = scmp.lt.s32.totalorder %s3828_s26, %s3828_s26 }
  0x3e   :  { %p3835_p2 = por %p3834_p1, %p3833_p0 }
  0x40   :  { %p3836_p3 = pnand %p3835_p2, %p3829_p13 }
  0x42   :  { %3839 = shalt.err (!%p3836_p3)
}
  0x43   :  { %s3876_s5 = smov 2368   ;;  %s3877_s27 = smov 148  }
  0x44   :  { %77 = dma.hbm_to_vmem [thread:$0]  %s4280_s9, 18944, %s72_s20, [#allocation9], %s3876_s5, %s3876_s5, %s3877_s27  }
  0x45   :  { %3862 = dma.done.wait [#allocation3], 896  }
  0x46   :  { %3863 = vsyncadd [#allocation3], 4294966400 }
  0x47   :  { %3864 = dma.done.wait [#allocation6], 8192  }
  0x48   :  { %3865 = vsyncadd [#allocation6], 4294959104 }
  0x49   :  { %3866 = dma.done.wait [#allocation9], 18944  }
  0x4a   :  { %3867 = vsyncadd [#allocation9], 4294948352  ;;  %v3452_v0 = vld [vmem:[#allocation5 + $0x40] sm:$0xff]   ;;  %v3456_v4 = vld [vmem:[#allocation5 + $0x48] sm:$0xff]   ;;  %v3878_v43 = vmov 0.0   ;;  %vm3879_vm0 = vmmov 0  }
  0x4b   :  { %v3453_v1 = vld [vmem:[#allocation5] sm:$0xff]   ;;  %3241 = vmatprep.subr.bf16.mxu0 %v3452_v0  ;;  %v3457_v5 = vld [vmem:[#allocation5 + $0x8] sm:$0xff]   ;;  %v3460_v8 = vld [vmem:[#allocation5 + $0x50] sm:$0xff]   ;;  %vm2154_vm1 = vcmask 523264  }
  0x4c   :  { %v3454_v2 = vld [vmem:[#allocation5 + $0xc0] sm:$0xff]   ;;  %3242 = vmatpush3.bf16.msra.mxu0 %v3453_v1  ;;  %v3458_v6 = vld [vmem:[#allocation5 + $0xc8] sm:$0xff]   ;;  %v3461_v9 = vld [vmem:[#allocation5 + $0x10] sm:$0xff]  }
  0x4d   :  { %v3455_v3 = vld [vmem:[#allocation5 + $0x80] sm:$0xff]   ;;  %3263 = vmatprep.subr.bf16.mxu1 %v3454_v2  ;;  %3243 = vmatprep.subr.bf16.mxu0 %v3456_v4  ;;  %v3459_v7 = vld [vmem:[#allocation5 + $0x88] sm:$0xff]   ;;  %v3462_v10 = vld [vmem:[#allocation5 + $0xd0] sm:$0xff]  }
  0x4e   :  { %3264 = vmatpush3.bf16.msra.mxu1 %v3455_v3  ;;  %v3463_v11 = vld [vmem:[#allocation5 + $0x90] sm:$0xff]   ;;  %v3464_v12 = vld [vmem:[#allocation5 + $0x58] sm:$0xff]   ;;  %v3468_v16 = vld [vmem:[#allocation5 + $0x60] sm:$0xff]  }
  0x4f   :  { %3265 = vmatprep.subr.bf16.mxu1 %v3458_v6  ;;  %v3465_v13 = vld [vmem:[#allocation5 + $0x18] sm:$0xff]   ;;  %v3469_v17 = vld [vmem:[#allocation5 + $0x20] sm:$0xff]   ;;  %v3472_v20 = vld [vmem:[#allocation5 + $0x68] sm:$0xff]  }
  0x50   :  { %3244 = vmatpush3.bf16.msra.mxu0 %v3457_v5  ;;  %v3466_v14 = vld [vmem:[#allocation5 + $0xd8] sm:$0xff]   ;;  %v3470_v18 = vld [vmem:[#allocation5 + $0xe0] sm:$0xff]   ;;  %v3473_v21 = vld [vmem:[#allocation5 + $0x28] sm:$0xff]  }
  0x51   :  { %3245 = vmatprep.subr.bf16.mxu0 %v3460_v8  ;;  %v3467_v15 = vld [vmem:[#allocation5 + $0x98] sm:$0xff]   ;;  %v3471_v19 = vld [vmem:[#allocation5 + $0xa0] sm:$0xff]   ;;  %v3474_v22 = vld [vmem:[#allocation5 + $0xe8] sm:$0xff]  }
  0x52   :  { %3266 = vmatpush3.bf16.msra.mxu1 %v3459_v7  ;;  %v3475_v23 = vld [vmem:[#allocation5 + $0xa8] sm:$0xff]   ;;  %v3476_v24 = vld [vmem:[#allocation5 + $0x70] sm:$0xff]   ;;  %v3480_v28 = vld [vmem:[#allocation5 + $0x78] sm:$0xff]  }
  0x53   :  { %3267 = vmatprep.subr.bf16.mxu1 %v3462_v10  ;;  %v3477_v25 = vld [vmem:[#allocation5 + $0x30] sm:$0xff]   ;;  %v3481_v29 = vld [vmem:[#allocation5 + $0x38] sm:$0xff]   ;;  %v93_v34 = vld [vmem:[#allocation2] sm:$0xff] }
  0x54   :  { %3246 = vmatpush3.bf16.msra.mxu0 %v3461_v9  ;;  %v3478_v26 = vld [vmem:[#allocation5 + $0xf0] sm:$0xff]   ;;  %v3482_v30 = vld [vmem:[#allocation5 + $0xf8] sm:$0xff]   ;;  %v100_v35 = vpack.c.bf16 %v93_v34, %v93_v34  ;;  %v3484_v36 = vld [vmem:[#allocation5 + $0x140] sm:$0xff]  }
  0x55   :  { %3247 = vmatprep.subr.bf16.mxu0 %v3464_v12  ;;  %v3479_v27 = vld [vmem:[#allocation5 + $0xb0] sm:$0xff]   ;;  %v3483_v33 = vld [vmem:[#allocation5 + $0xb8] sm:$0xff]   ;;  %v96_v37 = vld [vmem:[#allocation2 + $0x18] sm:$0xff] }
  0x56   :  { %3268 = vmatpush3.bf16.msra.mxu1 %v3463_v11  ;;  %v94_v31 = vld [vmem:[#allocation2 + $0x8] sm:$0xff]  ;;  %v103_v38 = vpack.c.bf16 %v96_v37, %v96_v37  ;;  %v3485_v39 = vld [vmem:[#allocation5 + $0x100] sm:$0xff]   ;;  %v95_v40 = vld [vmem:[#allocation2 + $0x10] sm:$0xff] }
  0x57   :  { %3269 = vmatprep.subr.bf16.mxu1 %v3466_v14  ;;  %v101_v32 = vpack.c.bf16 %v94_v31, %v94_v31  ;;  %v102_v41 = vpack.c.bf16 %v95_v40, %v95_v40  ;;  %v3486_v42 = vld [vmem:[#allocation5 + $0x180] sm:$0xff]   ;;  %v3487_v44 = vld [vmem:[#allocation5 + $0x148] sm:$0xff]   ;;  %v3490_v47 = vld [vmem:[#allocation5 + $0x150] sm:$0xff]  }
  0x58   :  { %3248 = vmatpush3.bf16.msra.mxu0 %v3465_v13  ;;  %634 = vmatprep.mubr.bf16.mxu1 %v103_v38  ;;  %v3488_v45 = vld [vmem:[#allocation5 + $0x108] sm:$0xff]   ;;  %v3491_v48 = vld [vmem:[#allocation5 + $0x110] sm:$0xff]   ;;  %v3493_v50 = vld [vmem:[#allocation5 + $0x158] sm:$0xff]  }
  0x59   :  { %3249 = vmatprep.subr.bf16.mxu0 %v3468_v16  ;;  %594 = vmatprep.mubr.bf16.mxu0 %v101_v32  ;;  %v3489_v46 = vld [vmem:[#allocation5 + $0x188] sm:$0xff]   ;;  %v3492_v49 = vld [vmem:[#allocation5 + $0x190] sm:$0xff]   ;;  %v3494_v51 = vld [vmem:[#allocation5 + $0x118] sm:$0xff]  }
  0x5a   :  { %3270 = vmatpush3.bf16.msra.mxu1 %v3467_v15  ;;  %v3496_v52 = vld [vmem:[#allocation5 + $0x160] sm:$0xff]   ;;  %v3495_v53 = vld [vmem:[#allocation5 + $0x198] sm:$0xff]   ;;  %v3499_v55 = vld [vmem:[#allocation5 + $0x168] sm:$0xff]  }
  0x5b   :  { %3271 = vmatprep.subr.bf16.mxu1 %v3470_v18  ;;  %v3497_v54 = vld [vmem:[#allocation5 + $0x120] sm:$0xff]   ;;  %v3500_v57 = vld [vmem:[#allocation5 + $0x128] sm:$0xff]   ;;  %v3502_v58 = vld [vmem:[#allocation5 + $0x170] sm:$0xff]  }
  0x5c   :  { %3250 = vmatpush3.bf16.msra.mxu0 %v3469_v17  ;;  %v3498_v56 = vld [vmem:[#allocation5 + $0x1a0] sm:$0xff]   ;;  %v3501_v59 = vld [vmem:[#allocation5 + $0x1a8] sm:$0xff]   ;;  %v3503_v60 = vld [vmem:[#allocation5 + $0x130] sm:$0xff]  }
  0x5d   :  { %3251 = vmatprep.subr.bf16.mxu0 %v3472_v20  ;;  %v98_v61 = vld [vmem:[#allocation2 + $0x28] sm:$0xff]  ;;  %v3505_v63 = vld [vmem:[#allocation5 + $0x178] sm:$0xff]   ;;  %v97_v2 = vld [vmem:[#allocation2 + $0x20] sm:$0xff] }
  0x5e   :  { %3272 = vmatpush3.bf16.msra.mxu1 %v3471_v19  ;;  %v3504_v62 = vld [vmem:[#allocation5 + $0x1b0] sm:$0xff]   ;;  %v105_v0 = vpack.c.bf16 %v98_v61, %v98_v61  ;;  %v3506_v1 = vld [vmem:[#allocation5 + $0x138] sm:$0xff]   ;;  %v104_v5 = vpack.c.bf16 %v97_v2, %v97_v2  ;;  %v3508_v7 = vld [vmem:[%s4274_s3] sm:$0xff]  }
  0x5f   :  { %3273 = vmatprep.subr.bf16.mxu1 %v3474_v22  ;;  %v3507_v3 = vld [vmem:[#allocation5 + $0x1b8] sm:$0xff]   ;;  %v3509_v8 = vld [vmem:[%s4274_s3 + $0x8] sm:$0xff]   ;;  %v3511_v10 = vld [vmem:[%s4274_s3 + $0x18] sm:$0xff]  }
  0x60   :  { %3252 = vmatpush3.bf16.msra.mxu0 %v3473_v21  ;;  %v99_v4 = vld [vmem:[#allocation2 + $0x30] sm:$0xff]  ;;  %v3512_v11 = vld [vmem:[%s4274_s3 + $0x20] sm:$0xff]   ;;  %v3513_v12 = vld [vmem:[%s4274_s3 + $0x28] sm:$0xff]  }
  0x61   :  { %3253 = vmatprep.subr.bf16.mxu0 %v3476_v24  ;;  %v106_v6 = vpack.c.bf16 %v99_v4, %v99_v4  ;;  %v3510_v9 = vld [vmem:[%s4274_s3 + $0x10] sm:$0xff]   ;;  %v3515_v14 = vld [vmem:[%s4274_s3 + $0x38] sm:$0xff]   ;;  %v3517_v16 = vld [vmem:[#allocation7 + $0x8] sm:$0xff]  }
  0x62   :  { %3274 = vmatpush3.bf16.msra.mxu1 %v3475_v23  ;;  %v3514_v13 = vld [vmem:[%s4274_s3 + $0x30] sm:$0xff]   ;;  %v3516_v15 = vld [vmem:[#allocation7] sm:$0xff]   ;;  %v3518_v17 = vld [vmem:[#allocation7 + $0x10] sm:$0xff]  }
  0x63   :  { %3275 = vmatprep.subr.bf16.mxu1 %v3478_v26  ;;  %v3519_v18 = vld [vmem:[#allocation7 + $0x18] sm:$0xff]   ;;  %v3520_v19 = vld [vmem:[#allocation7 + $0x20] sm:$0xff]   ;;  %v3521_v20 = vld [vmem:[#allocation7 + $0x28] sm:$0xff]  }
  0x64   :  { %3254 = vmatpush3.bf16.msra.mxu0 %v3477_v25  ;;  %v2990_v22 = vld [vmem:[%s4273_s2] ss:$0 sm:$0xff]  ;;  %v3532_v2 = vld [vmem:[#allocation8] ss:$148 sps:$4 sm:$0xff]  }
  0x65   :  { %3255 = vmatprep.subr.bf16.mxu0 %v3480_v28  ;;  %v3537_v4 = vld [vmem:[#allocation8 + $0x14] ss:$148 sps:$4 sm:$0xff]  }
  0x66   :  { %3276 = vmatpush3.bf16.msra.mxu1 %v3479_v27 }
  0x67   :  { %3277 = vmatprep.subr.bf16.mxu1 %v3482_v30 }
  0x68   :  { %3256 = vmatpush3.bf16.msra.mxu0 %v3481_v29 }
  0x69   :  { %3285 = vmatprep.subr.bf16.mxu0 %v3484_v36 }
  0x6a   :  { %3278 = vmatpush3.bf16.msra.mxu1 %v3483_v33 }
  0x6b   :  { %595 = vmatmul.mubr.bf16.vlgmr.msra.gmra.mrb[0].mxu0 %v100_v35  ;;  %3348 = vmatprep.subr.bf16.mxu1 %v3878_v43 }
  0x6c   :  { %3286 = vmatpush3.bf16.msra.mxu0 %v3485_v39  ;;  %674 = vmatprep.mubr.bf16.mxu0 %v105_v0  ;;  %v3530_v0 = vld [vmem:[%s4278_s7 + $0x30] sm:$0xff]  }
  0x6d   :  { %635 = vmatmul.mubr.bf16.vlgmr.msra.gmra.mrb[0].mxu1 %v102_v41  ;;  %3287 = vmatprep.subr.bf16.mxu0 %v3487_v44 }
  0x6e   :  { %3349 = vmatpush3.bf16.msra.mxu1 %v3486_v42  ;;  %3364 = vmatprep.mubr.msk.bf16.mxu1 %vm3879_vm0, %v3878_v43 }
  0x6f   :  { %3350 = vmatprep.subr.bf16.mxu1 %v3878_v43 }
  0x70   :  { %3288 = vmatpush3.bf16.msra.mxu0 %v3488_v45 }
  0x71   :  { %3289 = vmatprep.subr.bf16.mxu0 %v3490_v47 }
  0x72   :  { %3351 = vmatpush3.bf16.msra.mxu1 %v3489_v46 }
  0x73   :  { %3352 = vmatprep.subr.bf16.mxu1 %v3878_v43 }
  0x74   :  { %3290 = vmatpush3.bf16.msra.mxu0 %v3491_v48  ;;  %v3522_v48 = vld [vmem:[#allocation7 + $0x30] sm:$0xff]  }
  0x75   :  { %3291 = vmatprep.subr.bf16.mxu0 %v3493_v50  ;;  %v3524_v50 = vld [vmem:[%s4278_s7] sm:$0xff]  }
  0x76   :  { %3353 = vmatpush3.bf16.msra.mxu1 %v3492_v49  ;;  %v3523_v49 = vld [vmem:[#allocation7 + $0x38] sm:$0xff]  }
  0x77   :  { %3354 = vmatprep.subr.bf16.mxu1 %v3878_v43 }
  0x78   :  { %3292 = vmatpush3.bf16.msra.mxu0 %v3494_v51  ;;  %v3525_v51 = vld [vmem:[%s4278_s7 + $0x8] sm:$0xff]  }
  0x79   :  { %3293 = vmatprep.subr.bf16.mxu0 %v3496_v52  ;;  %v3526_v52 = vld [vmem:[%s4278_s7 + $0x10] sm:$0xff]  }
  0x7a   :  { %3355 = vmatpush3.bf16.msra.mxu1 %v3495_v53  ;;  %v3527_v53 = vld [vmem:[%s4278_s7 + $0x18] sm:$0xff]  }
  0x7b   :  { %3356 = vmatprep.subr.bf16.mxu1 %v3878_v43 }
  0x7c   :  { %3294 = vmatpush3.bf16.msra.mxu0 %v3497_v54  ;;  %v3528_v54 = vld [vmem:[%s4278_s7 + $0x20] sm:$0xff]  }
  0x7d   :  { %3295 = vmatprep.subr.bf16.mxu0 %v3499_v55  ;;  %v3529_v55 = vld [vmem:[%s4278_s7 + $0x28] sm:$0xff]  }
  0x7e   :  { %3357 = vmatpush3.bf16.msra.mxu1 %v3498_v56  ;;  %v3047_v56 = vld [vmem:[%s4275_s4] ss:$0 sm:$0xff] }
  0x7f   :  { %3358 = vmatprep.subr.bf16.mxu1 %v3878_v43 }
  0x80   :  { %3296 = vmatpush3.bf16.msra.mxu0 %v3500_v57 }
  0x81   :  { %3297 = vmatprep.subr.bf16.mxu0 %v3502_v58 }
  0x82   :  { %3359 = vmatpush3.bf16.msra.mxu1 %v3501_v59 }
  0x83   :  { %3360 = vmatprep.subr.bf16.mxu1 %v3878_v43 }
  0x84   :  { %3298 = vmatpush3.bf16.msra.mxu0 %v3503_v60 }
  0x85   :  { %3299 = vmatprep.subr.bf16.mxu0 %v3505_v63 }
  0x86   :  { %3361 = vmatpush3.bf16.msra.mxu1 %v3504_v62 }
  0x87   :  { %3362 = vmatprep.subr.bf16.mxu1 %v3878_v43 }
  0x88   :  { %3300 = vmatpush3.bf16.msra.mxu0 %v3506_v1  ;;  %v3531_v1 = vld [vmem:[%s4278_s7 + $0x38] sm:$0xff]  }
  0x89   :  { %3368 = vmatprep.subr.bf16.mxu0 %v3878_v43 }
  0x8a   :  { %3363 = vmatpush3.bf16.msra.mxu1 %v3507_v3  ;;  %v3534_v3 = vld [vmem:[#allocation8 + $0x4] ss:$148 sps:$4 sm:$0xff]  }
  0x8b   :  { %675 = vmatmul.mubr.bf16.vlgmr.msra.gmra.mrb[4].mxu0 %v104_v5  ;;  %3388 = vmatprep.subr.bf16.mxu1 %v3878_v43  ;;  %v3540_v5 = vld [vmem:[#allocation8 + $0x12c] ss:$148 sps:$4 sm:$0xff]  }
  0x8c   :  { %3384 = vmatprep.mubr.msk.bf16.mxu0 %vm3879_vm0, %v3878_v43  ;;  %3369 = vmatpush3.bf16.msra.mxu0 %v3508_v7  ;;  %v3546_v7 = vld [vmem:[#allocation8 + $0x254] ss:$148 sps:$4 sm:$0xff]  }
  0x8d   :  { %3365 = vmatmul.mubr.bf16.vlgmr.msra.gmra.mrb[4].mxu1 %v106_v6  ;;  %3370 = vmatprep.subr.bf16.mxu0 %v3878_v43  ;;  %v3538_v6 = vld [vmem:[#allocation8 + $0x128] ss:$148 sps:$4 sm:$0xff]  }
  0x8e   :  { %3404 = vmatprep.mubr.msk.bf16.mxu1 %vm3879_vm0, %v3878_v43  ;;  %3389 = vmatpush3.bf16.msra.mxu1 %v3516_v15 }
  0x8f   :  { %3390 = vmatprep.subr.bf16.mxu1 %v3878_v43 }
  0x90   :  { %3371 = vmatpush3.bf16.msra.mxu0 %v3509_v8  ;;  %v3544_v8 = vld [vmem:[#allocation8 + $0x250] ss:$148 sps:$4 sm:$0xff]  }
  0x91   :  { %3372 = vmatprep.subr.bf16.mxu0 %v3878_v43 }
  0x92   :  { %3391 = vmatpush3.bf16.msra.mxu1 %v3517_v16  ;;  %v3535_v16 = vld [vmem:[#allocation8 + $0x10] ss:$148 sps:$4 sm:$0xff]  }
  0x93   :  { %3392 = vmatprep.subr.bf16.mxu1 %v3878_v43 }
  0x94   :  { %3373 = vmatpush3.bf16.msra.mxu0 %v3510_v9  ;;  %v3056_v9 = vld [vmem:[%s4277_s6] ss:$0 sm:$0xff] }
  0x95   :  { %3374 = vmatprep.subr.bf16.mxu0 %v3878_v43 }
  0x96   :  { %3393 = vmatpush3.bf16.msra.mxu1 %v3518_v17 }
  0x97   :  { %3394 = vmatprep.subr.bf16.mxu1 %v3878_v43 }
  0x98   :  { %3375 = vmatpush3.bf16.msra.mxu0 %v3511_v10 }
  0x99   :  { %3376 = vmatprep.subr.bf16.mxu0 %v3878_v43 }
  0x9a   :  { %3395 = vmatpush3.bf16.msra.mxu1 %v3519_v18  ;;  %v3543_v18 = vld [vmem:[#allocation8 + $0x13c] ss:$148 sps:$4 sm:$0xff]  }
  0x9b   :  { %3396 = vmatprep.subr.bf16.mxu1 %v3878_v43 }
  0x9c   :  { %3377 = vmatpush3.bf16.msra.mxu0 %v3512_v11 }
  0x9d   :  { %3378 = vmatprep.subr.bf16.mxu0 %v3878_v43 }
  0x9e   :  { %3397 = vmatpush3.bf16.msra.mxu1 %v3520_v19  ;;  %v3541_v19 = vld [vmem:[#allocation8 + $0x138] ss:$148 sps:$4 sm:$0xff]  }
  0x9f   :  { %3398 = vmatprep.subr.bf16.mxu1 %v3878_v43 }
  0xa0   :  { %3379 = vmatpush3.bf16.msra.mxu0 %v3513_v12 }
  0xa1   :  { %3380 = vmatprep.subr.bf16.mxu0 %v3878_v43 }
  0xa2   :  { %3399 = vmatpush3.bf16.msra.mxu1 %v3521_v20  ;;  %v3549_v20 = vld [vmem:[#allocation8 + $0x264] ss:$148 sps:$4 sm:$0xff]  }
  0xa3   :  { %3400 = vmatprep.subr.bf16.mxu1 %v3878_v43 }
  0xa4   :  { %3381 = vmatpush3.bf16.msra.mxu0 %v3514_v13 }
  0xa5   :  { %3382 = vmatprep.subr.bf16.mxu0 %v3878_v43 }
  0xa6   :  { %3401 = vmatpush3.bf16.msra.mxu1 %v3522_v48  ;;  %v3576_v48 = vld [vmem:[#allocation8 + $0x384] ss:$148 sps:$4 sm:$0xff]  }
  0xa7   :  { %3402 = vmatprep.subr.bf16.mxu1 %v3878_v43 }
  0xa8   :  { %3383 = vmatpush3.bf16.msra.mxu0 %v3515_v14 }
  0xa9   :  { %3408 = vmatprep.subr.bf16.mxu0 %v3878_v43 }
  0xaa   :  { %3403 = vmatpush3.bf16.msra.mxu1 %v3523_v49  ;;  %v3579_v49 = vld [vmem:[#allocation8 + $0x39c] ss:$148 sps:$4 sm:$0xff]  }
  0xab   :  { %2158 = vmatprep.subr.bf16.mxu1 %v3534_v3  ;;  %v3601_v3 = vld [vmem:[#allocation8 + $0x3a8] ss:$148 sps:$4 sm:$0xff]  }
 0x13e   :  { %v3257_v21 = vpop.f32.mrb[0].mxu0 }
 0x13f   :  { %v3258_v23 = vpop.f32.mrb[1].mxu0 }
 0x140   :  { %v3259_v24 = vadd.f32 %v3258_v23, %v3257_v21  ;;  %v3260_v25 = vpop.f32.mrb[2].mxu0  ;;  %v3279_v26 = vpop.f32.mrb[0].mxu1  ;;  %v3547_v21 = vld [vmem:[#allocation8 + $0x260] ss:$148 sps:$4 sm:$0xff]  }
 0x141   :  { %v3261_v27 = vpop.f32.mrb[3].mxu0  ;;  %v3280_v29 = vpop.f32.mrb[1].mxu1  ;;  %v3555_v23 = vld [vmem:[#allocation8 + $0x38c] ss:$148 sps:$4 sm:$0xff]   ;;  %v3553_v25 = vld [vmem:[#allocation8 + $0x388] ss:$148 sps:$4 sm:$0xff]  }
 0x142   :  { %v597_v28 = vadd.f32 %v3259_v24, %v2990_v22  ;;  %v3281_v30 = vadd.f32 %v3280_v29, %v3279_v26  ;;  %v3282_v31 = vpop.f32.mrb[2].mxu1  ;;  %v3552_v22 = vld [vmem:[#allocation8 + $0x37c] ss:$148 sps:$4 sm:$0xff]   ;;  %v3550_v24 = vld [vmem:[#allocation8 + $0x378] ss:$148 sps:$4 sm:$0xff]   ;;  %v3880_v27 = vmov 0  }
 0x143   :  { %v3283_v32 = vpop.f32.mrb[3].mxu1  ;;  %v3558_v26 = vld [vmem:[#allocation8 + $0xc] ss:$148 sps:$4 sm:$0xff]   ;;  %v3065_v29 = vld [vmem:[%s4279_s8] ss:$0 sm:$0xff] }
 0x144   :  { %v637_v33 = vadd.f32 %v3281_v30, %v597_v28  ;;  %v3561_v28 = vld [vmem:[#allocation8 + $0x24] ss:$148 sps:$4 sm:$0xff]  }
 0x15e   :  { %v3301_v34 = vpop.f32.mrb[4].mxu0 }
 0x15f   :  { %v3302_v35 = vpop.f32.mrb[5].mxu0 }
 0x160   :  { %v3303_v36 = vadd.f32 %v3302_v35, %v3301_v34  ;;  %v3304_v37 = vpop.f32.mrb[6].mxu0  ;;  %v716_v38 = vpop.f32.mrb[4].mxu1 }
 0x161   :  { %v3305_v39 = vpop.f32.mrb[7].mxu0  ;;  %v3366_v41 = vpop.f32.mrb[5].mxu1  ;;  %v3559_v37 = vld [vmem:[#allocation8 + $0x20] ss:$148 sps:$4 sm:$0xff]  }
 0x162   :  { %v677_v40 = vadd.f32 %v3303_v36, %v637_v33  ;;  %v719_v42 = vpop.f32.mrb[6].mxu1  ;;  %v3556_v36 = vld [vmem:[#allocation8 + $0x8] ss:$148 sps:$4 sm:$0xff]   ;;  %v3562_v41 = vld [vmem:[#allocation8 + $0x130] ss:$148 sps:$4 sm:$0xff]  }
 0x163   :  { %v3367_v45 = vpop.f32.mrb[7].mxu1  ;;  %v3564_v39 = vld [vmem:[#allocation8 + $0x134] ss:$148 sps:$4 sm:$0xff]  }
 0x164   :  { %v717_v44 = vadd.f32 %v716_v38, %v677_v40  ;;  %v3567_v40 = vld [vmem:[#allocation8 + $0x14c] ss:$148 sps:$4 sm:$0xff]   ;;  %v3565_v42 = vld [vmem:[#allocation8 + $0x148] ss:$148 sps:$4 sm:$0xff]  }
 0x165   :  { %v3573_v45 = vld [vmem:[#allocation8 + $0x274] ss:$148 sps:$4 sm:$0xff]  }
 0x166   :  { %v722_v46 = vmax.f32 %v717_v44, 0.0  ;;  %v3570_v44 = vld [vmem:[#allocation8 + $0x25c] ss:$148 sps:$4 sm:$0xff]  }
 0x168   :  { %v723_v47 = vpack.c.bf16 %v722_v46, %v722_v46  ;;  %v3568_v46 = vld [vmem:[#allocation8 + $0x258] ss:$148 sps:$4 sm:$0xff]  }
 0x16a   :  { %3385 = vmatmul.mubr.bf16.vlgmr.msra.gmra.mrb[8].mxu0 %v723_v47  ;;  %v3571_v47 = vld [vmem:[#allocation8 + $0x270] ss:$148 sps:$4 sm:$0xff]  }
 0x16b   :  { %3424 = vmatprep.mubr.msk.bf16.mxu0 %vm3879_vm0, %v3878_v43  ;;  %3409 = vmatpush3.bf16.msra.mxu0 %v3524_v50  ;;  %v3574_v50 = vld [vmem:[#allocation8 + $0x380] ss:$148 sps:$4 sm:$0xff]  }
 0x16c   :  { %3410 = vmatprep.subr.bf16.mxu0 %v3878_v43 }
 0x16f   :  { %3411 = vmatpush3.bf16.msra.mxu0 %v3525_v51  ;;  %v3577_v51 = vld [vmem:[#allocation8 + $0x398] ss:$148 sps:$4 sm:$0xff]  }
 0x170   :  { %3412 = vmatprep.subr.bf16.mxu0 %v3878_v43 }
 0x173   :  { %3413 = vmatpush3.bf16.msra.mxu0 %v3526_v52  ;;  %v3582_v52 = vld [vmem:[#allocation8 + $0x1c] ss:$148 sps:$4 sm:$0xff]  }
 0x174   :  { %3414 = vmatprep.subr.bf16.mxu0 %v3878_v43 }
 0x177   :  { %3415 = vmatpush3.bf16.msra.mxu0 %v3527_v53  ;;  %v3585_v53 = vld [vmem:[#allocation8 + $0x34] ss:$148 sps:$4 sm:$0xff]  }
 0x178   :  { %3416 = vmatprep.subr.bf16.mxu0 %v3878_v43 }
 0x17b   :  { %3417 = vmatpush3.bf16.msra.mxu0 %v3528_v54  ;;  %v3580_v54 = vld [vmem:[#allocation8 + $0x18] ss:$148 sps:$4 sm:$0xff]  }
 0x17c   :  { %3418 = vmatprep.subr.bf16.mxu0 %v3878_v43 }
 0x17f   :  { %3419 = vmatpush3.bf16.msra.mxu0 %v3529_v55  ;;  %v3583_v55 = vld [vmem:[#allocation8 + $0x30] ss:$148 sps:$4 sm:$0xff]  }
 0x180   :  { %3420 = vmatprep.subr.bf16.mxu0 %v3878_v43 }
 0x183   :  { %3421 = vmatpush3.bf16.msra.mxu0 %v3530_v0  ;;  %v3600_v0 = vld [vmem:[#allocation8 + $0x394] ss:$148 sps:$4 sm:$0xff]  }
 0x184   :  { %3422 = vmatprep.subr.bf16.mxu0 %v3878_v43 }
 0x187   :  { %3423 = vmatpush3.bf16.msra.mxu0 %v3531_v1  ;;  %v3603_v1 = vld [vmem:[#allocation8 + $0x3ac] ss:$148 sps:$4 sm:$0xff]  }
 0x188   :  { %2240 = vmatprep.subr.bf16.mxu0 %v3537_v4  ;;  %v3606_v4 = vld [vmem:[#allocation8 + $0x2c] ss:$148 sps:$4 sm:$0xff]  }
 0x23d   :  { %v829_v57 = vpop.f32.mrb[8].mxu0 }
 0x23e   :  { %v830_v58 = vadd.f32 %v3047_v56, %v829_v57  ;;  %v3386_v59 = vpop.f32.mrb[9].mxu0  ;;  %v3588_v56 = vld [vmem:[#allocation8 + $0x144] ss:$148 sps:$4 sm:$0xff]   ;;  %v3591_v57 = vld [vmem:[#allocation8 + $0x15c] ss:$148 sps:$4 sm:$0xff]  }
 0x23f   :  { %v832_v60 = vpop.f32.mrb[10].mxu0  ;;  %v3589_v59 = vld [vmem:[#allocation8 + $0x158] ss:$148 sps:$4 sm:$0xff]  }
 0x240   :  { %v835_v61 = vmax.f32 %v830_v58, 0.0  ;;  %v3387_v62 = vpop.f32.mrb[11].mxu0  ;;  %v3586_v58 = vld [vmem:[#allocation8 + $0x140] ss:$148 sps:$4 sm:$0xff]  }
 0x241   :  { %v3594_v60 = vld [vmem:[#allocation8 + $0x26c] ss:$148 sps:$4 sm:$0xff]   ;;  %v3592_v62 = vld [vmem:[#allocation8 + $0x268] ss:$148 sps:$4 sm:$0xff]  }
 0x242   :  { %v836_v63 = vpack.c.bf16 %v835_v61, %v835_v61  ;;  %v3597_v61 = vld [vmem:[#allocation8 + $0x284] ss:$148 sps:$4 sm:$0xff]  }
 0x244   :  { %3405 = vmatmul.mubr.bf16.vlgmr.msra.gmra.mrb[8].mxu1 %v836_v63  ;;  %v3595_v63 = vld [vmem:[#allocation8 + $0x280] ss:$148 sps:$4 sm:$0xff]  }
 0x245   :  { %2159 = vmatpush1.bf16.msra.mxu1 %v3532_v2  ;;  %2190 = vmatprep.mubr.bf16.mxu1 %v3880_v27  ;;  %v3598_v2 = vld [vmem:[#allocation8 + $0x390] ss:$148 sps:$4 sm:$0xff]  }
 0x246   :  { %2160 = vmatprep.subr.bf16.mxu1 %v3540_v5  ;;  %v3609_v5 = vld [vmem:[#allocation8 + $0x44] ss:$148 sps:$4 sm:$0xff]  }
 0x249   :  { %2161 = vmatpush1.bf16.msra.mxu1 %v3538_v6  ;;  %v3604_v6 = vld [vmem:[#allocation8 + $0x28] ss:$148 sps:$4 sm:$0xff]  }
 0x24a   :  { %2162 = vmatprep.subr.bf16.mxu1 %v3546_v7  ;;  %v3607_v7 = vld [vmem:[#allocation8 + $0x40] ss:$148 sps:$4 sm:$0xff]  }
 0x24d   :  { %2163 = vmatpush1.bf16.msra.mxu1 %v3544_v8  ;;  %v3612_v8 = vld [vmem:[#allocation8 + $0x154] ss:$148 sps:$4 sm:$0xff]  }
 0x24e   :  { %2164 = vmatprep.subr.bf16.mxu1 %v3552_v22  ;;  %v3628_v22 = vld [vmem:[#allocation8 + $0x38] ss:$148 sps:$4 sm:$0xff]  }
 0x251   :  { %2165 = vmatpush1.bf16.msra.mxu1 %v3550_v24  ;;  %v3636_v24 = vld [vmem:[#allocation8 + $0x164] ss:$148 sps:$4 sm:$0xff]  }
 0x252   :  { %2199 = vmatprep.subr.bf16.mxu1 %v3558_v26  ;;  %v3634_v26 = vld [vmem:[#allocation8 + $0x160] ss:$148 sps:$4 sm:$0xff]  }
 0x317   :  { %v942_v10 = vpop.f32.mrb[8].mxu1 }
 0x318   :  { %v943_v11 = vadd.f32 %v3056_v9, %v942_v10  ;;  %v3406_v12 = vpop.f32.mrb[9].mxu1  ;;  %v3615_v9 = vld [vmem:[#allocation8 + $0x16c] ss:$148 sps:$4 sm:$0xff]   ;;  %v3610_v10 = vld [vmem:[#allocation8 + $0x150] ss:$148 sps:$4 sm:$0xff]  }
 0x319   :  { %v945_v13 = vpop.f32.mrb[10].mxu1  ;;  %v3618_v12 = vld [vmem:[#allocation8 + $0x27c] ss:$148 sps:$4 sm:$0xff]  }
 0x31a   :  { %v948_v14 = vmax.f32 %v943_v11, 0.0  ;;  %v3407_v15 = vpop.f32.mrb[11].mxu1  ;;  %v3613_v11 = vld [vmem:[#allocation8 + $0x168] ss:$148 sps:$4 sm:$0xff]  }
 0x31b   :  { %v3621_v13 = vld [vmem:[#allocation8 + $0x294] ss:$148 sps:$4 sm:$0xff]   ;;  %v3619_v15 = vld [vmem:[#allocation8 + $0x290] ss:$148 sps:$4 sm:$0xff]  }
 0x31c   :  { %v949_v17 = vpack.c.bf16 %v948_v14, %v948_v14  ;;  %v3616_v14 = vld [vmem:[#allocation8 + $0x278] ss:$148 sps:$4 sm:$0xff]  }
 0x31e   :  { %3425 = vmatmul.mubr.bf16.vlgmr.msra.gmra.mrb[12].mxu0 %v949_v17  ;;  %v3627_v17 = vld [vmem:[#allocation8 + $0x3bc] ss:$148 sps:$4 sm:$0xff]  }
 0x31f   :  { %2241 = vmatpush1.bf16.msra.mxu0 %v3535_v16  ;;  %2272 = vmatprep.mubr.bf16.mxu0 %v3880_v27  ;;  %v3624_v16 = vld [vmem:[#allocation8 + $0x3a4] ss:$148 sps:$4 sm:$0xff]  }
 0x320   :  { %2242 = vmatprep.subr.bf16.mxu0 %v3543_v18  ;;  %v3622_v18 = vld [vmem:[#allocation8 + $0x3a0] ss:$148 sps:$4 sm:$0xff]  }
 0x323   :  { %2243 = vmatpush1.bf16.msra.mxu0 %v3541_v19  ;;  %v3625_v19 = vld [vmem:[#allocation8 + $0x3b8] ss:$148 sps:$4 sm:$0xff]  }
 0x324   :  { %2244 = vmatprep.subr.bf16.mxu0 %v3549_v20  ;;  %v3630_v20 = vld [vmem:[#allocation8 + $0x3c] ss:$148 sps:$4 sm:$0xff]  }
 0x327   :  { %2245 = vmatpush1.bf16.msra.mxu0 %v3547_v21  ;;  %v3633_v21 = vld [vmem:[#allocation8 + $0x54] ss:$148 sps:$4 sm:$0xff]  }
 0x328   :  { %2246 = vmatprep.subr.bf16.mxu0 %v3555_v23  ;;  %v3631_v23 = vld [vmem:[#allocation8 + $0x50] ss:$148 sps:$4 sm:$0xff]  }
 0x32b   :  { %2247 = vmatpush1.bf16.msra.mxu0 %v3553_v25  ;;  %v3639_v25 = vld [vmem:[#allocation8 + $0x17c] ss:$148 sps:$4 sm:$0xff]  }
 0x32c   :  { %2322 = vmatprep.subr.bf16.mxu0 %v3561_v28  ;;  %v3637_v28 = vld [vmem:[#allocation8 + $0x178] ss:$148 sps:$4 sm:$0xff]  }
 0x3f1   :  { %v1055_v30 = vpop.f32.mrb[12].mxu0 }
 0x3f2   :  { %v1056_v31 = vadd.f32 %v3065_v29, %v1055_v30  ;;  %v3426_v32 = vpop.f32.mrb[13].mxu0  ;;  %v3642_v29 = vld [vmem:[#allocation8 + $0x28c] ss:$148 sps:$4 sm:$0xff]   ;;  %v3645_v30 = vld [vmem:[#allocation8 + $0x2a4] ss:$148 sps:$4 sm:$0xff]  }
 0x3f3   :  { %v1058_v33 = vpop.f32.mrb[14].mxu0  ;;  %v3643_v32 = vld [vmem:[#allocation8 + $0x2a0] ss:$148 sps:$4 sm:$0xff]  }
 0x3f4   :  { %v1061_v34 = vmax.f32 %v1056_v31, 0.0  ;;  %v3427_v35 = vpop.f32.mrb[15].mxu0  ;;  %v3640_v31 = vld [vmem:[#allocation8 + $0x288] ss:$148 sps:$4 sm:$0xff]  }
 0x3f5   :  { %v3648_v33 = vld [vmem:[#allocation8 + $0x3b4] ss:$148 sps:$4 sm:$0xff]   ;;  %v3646_v35 = vld [vmem:[#allocation8 + $0x3b0] ss:$148 sps:$4 sm:$0xff]  }
 0x3f6   :  { %v4098_v38 = vpack.c.bf16 %v1061_v34, %v1061_v34  ;;  %v3651_v34 = vld [vmem:[#allocation8 + $0x3cc] ss:$148 sps:$4 sm:$0xff]  }
 0x3f8   :  { %3222 = vmatmul.mubr.msk.bf16.vlgmr.msra.gmra.mrb[12].mxu1 %vm2154_vm1, %v4098_v38  ;;  %3224 = vmatmul.mubr.msk.bf16.vlgmr.msra.gmra.mrb[16].mxu0 %vm2154_vm1, %v4098_v38 }
 0x3f9   :  { %2200 = vmatpush1.bf16.msra.mxu1 %v3556_v36  ;;  %2323 = vmatpush1.bf16.msra.mxu0 %v3559_v37  ;;  %v3649_v36 = vld [vmem:[#allocation8 + $0x3c8] ss:$148 sps:$4 sm:$0xff]   ;;  %v3654_v37 = vld [vmem:[#allocation8 + $0x4c] ss:$148 sps:$4 sm:$0xff]  }
 0x3fa   :  { %2201 = vmatprep.subr.bf16.mxu1 %v3564_v39  ;;  %2324 = vmatprep.subr.bf16.mxu0 %v3567_v40  ;;  %v3657_v39 = vld [vmem:[#allocation8 + $0x64] ss:$148 sps:$4 sm:$0xff]   ;;  %v3652_v40 = vld [vmem:[#allocation8 + $0x48] ss:$148 sps:$4 sm:$0xff]  }
 0x3fb   :  { %2231 = vmatprep.mubr.bf16.mxu1 %v3880_v27  ;;  %2354 = vmatprep.mubr.bf16.mxu0 %v3880_v27 }
 0x3fd   :  { %2202 = vmatpush1.bf16.msra.mxu1 %v3562_v41  ;;  %2325 = vmatpush1.bf16.msra.mxu0 %v3565_v42  ;;  %v3655_v41 = vld [vmem:[#allocation8 + $0x60] ss:$148 sps:$4 sm:$0xff]  }
 0x3fe   :  { %2203 = vmatprep.subr.bf16.mxu1 %v3570_v44  ;;  %2326 = vmatprep.subr.bf16.mxu0 %v3573_v45  ;;  %v3660_v42 = vld [vmem:[#allocation8 + $0x174] ss:$148 sps:$4 sm:$0xff]   ;;  %v3663_v44 = vld [vmem:[#allocation8 + $0x18c] ss:$148 sps:$4 sm:$0xff]   ;;  %v3658_v45 = vld [vmem:[#allocation8 + $0x170] ss:$148 sps:$4 sm:$0xff]  }
 0x401   :  { %2204 = vmatpush1.bf16.msra.mxu1 %v3568_v46  ;;  %2327 = vmatpush1.bf16.msra.mxu0 %v3571_v47  ;;  %v3661_v46 = vld [vmem:[#allocation8 + $0x188] ss:$148 sps:$4 sm:$0xff]  }
 0x402   :  { %2205 = vmatprep.subr.bf16.mxu1 %v3576_v48  ;;  %2328 = vmatprep.subr.bf16.mxu0 %v3579_v49  ;;  %v3666_v47 = vld [vmem:[#allocation8 + $0x29c] ss:$148 sps:$4 sm:$0xff]   ;;  %v3669_v48 = vld [vmem:[#allocation8 + $0x2b4] ss:$148 sps:$4 sm:$0xff]   ;;  %v3664_v49 = vld [vmem:[#allocation8 + $0x298] ss:$148 sps:$4 sm:$0xff]  }
 0x405   :  { %2206 = vmatpush1.bf16.msra.mxu1 %v3574_v50  ;;  %2329 = vmatpush1.bf16.msra.mxu0 %v3577_v51  ;;  %v3667_v50 = vld [vmem:[#allocation8 + $0x2b0] ss:$148 sps:$4 sm:$0xff]  }
 0x406   :  { %2281 = vmatprep.subr.bf16.mxu1 %v3582_v52  ;;  %2404 = vmatprep.subr.bf16.mxu0 %v3585_v53  ;;  %v3672_v51 = vld [vmem:[#allocation8 + $0x3c4] ss:$148 sps:$4 sm:$0xff]   ;;  %v3675_v52 = vld [vmem:[#allocation8 + $0x3dc] ss:$148 sps:$4 sm:$0xff]   ;;  %v3670_v53 = vld [vmem:[#allocation8 + $0x3c0] ss:$148 sps:$4 sm:$0xff]  }
 0x408   :  { %3223 = vmatmul.mubr.msk.bf16.vlgmr.msra.gmra.mrb[16].mxu1 %vm2154_vm1, %v4098_v38  ;;  %3226 = vmatmul.mubr.msk.bf16.vlgmr.msra.gmra.mrb[20].mxu0 %vm2154_vm1, %v4098_v38 }
 0x409   :  { %2282 = vmatpush1.bf16.msra.mxu1 %v3580_v54  ;;  %2405 = vmatpush1.bf16.msra.mxu0 %v3583_v55  ;;  %v3673_v54 = vld [vmem:[#allocation8 + $0x3d8] ss:$148 sps:$4 sm:$0xff]   ;;  %v3678_v55 = vld [vmem:[#allocation8 + $0x5c] ss:$148 sps:$4 sm:$0xff]  }
 0x40a   :  { %2283 = vmatprep.subr.bf16.mxu1 %v3588_v56  ;;  %2406 = vmatprep.subr.bf16.mxu0 %v3591_v57  ;;  %v3681_v56 = vld [vmem:[#allocation8 + $0x74] ss:$148 sps:$4 sm:$0xff]   ;;  %v3676_v57 = vld [vmem:[#allocation8 + $0x58] ss:$148 sps:$4 sm:$0xff]  }
 0x40b   :  { %2313 = vmatprep.mubr.bf16.mxu1 %v3880_v27  ;;  %2436 = vmatprep.mubr.bf16.mxu0 %v3880_v27 }
 0x40d   :  { %2284 = vmatpush1.bf16.msra.mxu1 %v3586_v58  ;;  %2407 = vmatpush1.bf16.msra.mxu0 %v3589_v59  ;;  %v3679_v58 = vld [vmem:[#allocation8 + $0x70] ss:$148 sps:$4 sm:$0xff]  }
 0x40e   :  { %2285 = vmatprep.subr.bf16.mxu1 %v3594_v60  ;;  %2408 = vmatprep.subr.bf16.mxu0 %v3597_v61  ;;  %v3684_v59 = vld [vmem:[#allocation8 + $0x184] ss:$148 sps:$4 sm:$0xff]   ;;  %v3687_v60 = vld [vmem:[#allocation8 + $0x19c] ss:$148 sps:$4 sm:$0xff]   ;;  %v3682_v61 = vld [vmem:[#allocation8 + $0x180] ss:$148 sps:$4 sm:$0xff]  }
 0x411   :  { %2286 = vmatpush1.bf16.msra.mxu1 %v3592_v62  ;;  %2409 = vmatpush1.bf16.msra.mxu0 %v3595_v63  ;;  %v3685_v62 = vld [vmem:[#allocation8 + $0x198] ss:$148 sps:$4 sm:$0xff]  }
 0x412   :  { %2287 = vmatprep.subr.bf16.mxu1 %v3600_v0  ;;  %2410 = vmatprep.subr.bf16.mxu0 %v3603_v1  ;;  %v3690_v63 = vld [vmem:[#allocation8 + $0x2ac] ss:$148 sps:$4 sm:$0xff]   ;;  %v3693_v0 = vld [vmem:[#allocation8 + $0x2c4] ss:$148 sps:$4 sm:$0xff]   ;;  %v3688_v1 = vld [vmem:[#allocation8 + $0x2a8] ss:$148 sps:$4 sm:$0xff]  }
 0x415   :  { %2288 = vmatpush1.bf16.msra.mxu1 %v3598_v2  ;;  %2411 = vmatpush1.bf16.msra.mxu0 %v3601_v3  ;;  %v3691_v2 = vld [vmem:[#allocation8 + $0x2c0] ss:$148 sps:$4 sm:$0xff]  }
 0x416   :  { %2363 = vmatprep.subr.bf16.mxu1 %v3606_v4  ;;  %2486 = vmatprep.subr.bf16.mxu0 %v3609_v5  ;;  %v3696_v3 = vld [vmem:[#allocation8 + $0x3d4] ss:$148 sps:$4 sm:$0xff]   ;;  %v3699_v4 = vld [vmem:[#allocation8 + $0x3ec] ss:$148 sps:$4 sm:$0xff]   ;;  %v3694_v5 = vld [vmem:[#allocation8 + $0x3d0] ss:$148 sps:$4 sm:$0xff]  }
 0x418   :  { %3225 = vmatmul.mubr.msk.bf16.vlgmr.msra.gmra.mrb[20].mxu1 %vm2154_vm1, %v4098_v38  ;;  %3228 = vmatmul.mubr.msk.bf16.vlgmr.msra.gmra.mrb[24].mxu0 %vm2154_vm1, %v4098_v38 }
 0x419   :  { %2364 = vmatpush1.bf16.msra.mxu1 %v3604_v6  ;;  %2487 = vmatpush1.bf16.msra.mxu0 %v3607_v7  ;;  %v3697_v6 = vld [vmem:[#allocation8 + $0x3e8] ss:$148 sps:$4 sm:$0xff]   ;;  %v3702_v7 = vld [vmem:[#allocation8 + $0x6c] ss:$148 sps:$4 sm:$0xff]  }
 0x41a   :  { %2365 = vmatprep.subr.bf16.mxu1 %v3612_v8  ;;  %2488 = vmatprep.subr.bf16.mxu0 %v3615_v9  ;;  %v3705_v8 = vld [vmem:[#allocation8 + $0x84] ss:$148 sps:$4 sm:$0xff]   ;;  %v3700_v9 = vld [vmem:[#allocation8 + $0x68] ss:$148 sps:$4 sm:$0xff]  }
 0x41b   :  { %2395 = vmatprep.mubr.bf16.mxu1 %v3880_v27  ;;  %2518 = vmatprep.mubr.bf16.mxu0 %v3880_v27 }
 0x41d   :  { %2366 = vmatpush1.bf16.msra.mxu1 %v3610_v10  ;;  %2489 = vmatpush1.bf16.msra.mxu0 %v3613_v11  ;;  %v3703_v10 = vld [vmem:[#allocation8 + $0x80] ss:$148 sps:$4 sm:$0xff]  }
 0x41e   :  { %2367 = vmatprep.subr.bf16.mxu1 %v3618_v12  ;;  %2490 = vmatprep.subr.bf16.mxu0 %v3621_v13  ;;  %v3708_v11 = vld [vmem:[#allocation8 + $0x194] ss:$148 sps:$4 sm:$0xff]   ;;  %v3711_v12 = vld [vmem:[#allocation8 + $0x1ac] ss:$148 sps:$4 sm:$0xff]   ;;  %v3706_v13 = vld [vmem:[#allocation8 + $0x190] ss:$148 sps:$4 sm:$0xff]  }
 0x421   :  { %2368 = vmatpush1.bf16.msra.mxu1 %v3616_v14  ;;  %2491 = vmatpush1.bf16.msra.mxu0 %v3619_v15  ;;  %v3709_v14 = vld [vmem:[#allocation8 + $0x1a8] ss:$148 sps:$4 sm:$0xff]  }
 0x422   :  { %2369 = vmatprep.subr.bf16.mxu1 %v3624_v16  ;;  %2492 = vmatprep.subr.bf16.mxu0 %v3627_v17  ;;  %v3714_v15 = vld [vmem:[#allocation8 + $0x2bc] ss:$148 sps:$4 sm:$0xff]   ;;  %v3717_v16 = vld [vmem:[#allocation8 + $0x2d4] ss:$148 sps:$4 sm:$0xff]   ;;  %v3712_v17 = vld [vmem:[#allocation8 + $0x2b8] ss:$148 sps:$4 sm:$0xff]  }
 0x425   :  { %2370 = vmatpush1.bf16.msra.mxu1 %v3622_v18  ;;  %2493 = vmatpush1.bf16.msra.mxu0 %v3625_v19  ;;  %v3715_v18 = vld [vmem:[#allocation8 + $0x2d0] ss:$148 sps:$4 sm:$0xff]  }
 0x426   :  { %2445 = vmatprep.subr.bf16.mxu1 %v3630_v20  ;;  %2568 = vmatprep.subr.bf16.mxu0 %v3633_v21  ;;  %v3720_v19 = vld [vmem:[#allocation8 + $0x3e4] ss:$148 sps:$4 sm:$0xff]   ;;  %v3723_v20 = vld [vmem:[#allocation8 + $0x3fc] ss:$148 sps:$4 sm:$0xff]   ;;  %v3718_v21 = vld [vmem:[#allocation8 + $0x3e0] ss:$148 sps:$4 sm:$0xff]  }
 0x428   :  { %3227 = vmatmul.mubr.msk.bf16.vlgmr.msra.gmra.mrb[24].mxu1 %vm2154_vm1, %v4098_v38  ;;  %3230 = vmatmul.mubr.msk.bf16.vlgmr.msra.gmra.mrb[28].mxu0 %vm2154_vm1, %v4098_v38 }
 0x429   :  { %2446 = vmatpush1.bf16.msra.mxu1 %v3628_v22  ;;  %2569 = vmatpush1.bf16.msra.mxu0 %v3631_v23  ;;  %v3721_v22 = vld [vmem:[#allocation8 + $0x3f8] ss:$148 sps:$4 sm:$0xff]   ;;  %v3726_v23 = vld [vmem:[#allocation8 + $0x7c] ss:$148 sps:$4 sm:$0xff]  }
 0x42a   :  { %2447 = vmatprep.subr.bf16.mxu1 %v3636_v24  ;;  %2570 = vmatprep.subr.bf16.mxu0 %v3639_v25  ;;  %v3724_v24 = vld [vmem:[#allocation8 + $0x78] ss:$148 sps:$4 sm:$0xff]   ;;  %v3727_v25 = vld [vmem:[#allocation8 + $0x90] ss:$148 sps:$4 sm:$0xff]  }
 0x42b   :  { %2477 = vmatprep.mubr.bf16.mxu1 %v3880_v27  ;;  %2600 = vmatprep.mubr.bf16.mxu0 %v3880_v27 }
 0x42d   :  { %2448 = vmatpush1.bf16.msra.mxu1 %v3634_v26  ;;  %2571 = vmatpush1.bf16.msra.mxu0 %v3637_v28  ;;  %v3730_v26 = vld [vmem:[#allocation8 + $0x1a4] ss:$148 sps:$4 sm:$0xff]   ;;  %v3728_v28 = vld [vmem:[#allocation8 + $0x1a0] ss:$148 sps:$4 sm:$0xff]  }
 0x42e   :  { %2449 = vmatprep.subr.bf16.mxu1 %v3642_v29  ;;  %2572 = vmatprep.subr.bf16.mxu0 %v3645_v30  ;;  %v3731_v29 = vld [vmem:[#allocation8 + $0x1b8] ss:$148 sps:$4 sm:$0xff]  }
 0x42f   :  { %v3734_v30 = vld [vmem:[#allocation8 + $0x2cc] ss:$148 sps:$4 sm:$0xff]  }
 0x431   :  { %2450 = vmatpush1.bf16.msra.mxu1 %v3640_v31  ;;  %2573 = vmatpush1.bf16.msra.mxu0 %v3643_v32  ;;  %v3732_v31 = vld [vmem:[#allocation8 + $0x2c8] ss:$148 sps:$4 sm:$0xff]   ;;  %v3735_v32 = vld [vmem:[#allocation8 + $0x2e0] ss:$148 sps:$4 sm:$0xff]  }
 0x432   :  { %2451 = vmatprep.subr.bf16.mxu1 %v3648_v33  ;;  %2574 = vmatprep.subr.bf16.mxu0 %v3651_v34  ;;  %v3738_v33 = vld [vmem:[#allocation8 + $0x3f4] ss:$148 sps:$4 sm:$0xff]   ;;  %v3736_v34 = vld [vmem:[#allocation8 + $0x3f0] ss:$148 sps:$4 sm:$0xff]  }
 0x435   :  { %2452 = vmatpush1.bf16.msra.mxu1 %v3646_v35  ;;  %2575 = vmatpush1.bf16.msra.mxu0 %v3649_v36  ;;  %v3739_v35 = vld [vmem:[#allocation8 + $0x408] ss:$148 sps:$4 sm:$0xff]   ;;  %v3742_v36 = vld [vmem:[#allocation8 + $0x8c] ss:$148 sps:$4 sm:$0xff]  }
 0x436   :  { %2527 = vmatprep.subr.bf16.mxu1 %v3654_v37  ;;  %2650 = vmatprep.subr.bf16.mxu0 %v3657_v39  ;;  %v3740_v37 = vld [vmem:[#allocation8 + $0x88] ss:$148 sps:$4 sm:$0xff]  }
 0x437   :  { %v3745_v39 = vld [vmem:[#allocation8 + $0x1b4] ss:$148 sps:$4 sm:$0xff]  }
 0x438   :  { %3229 = vmatmul.mubr.msk.bf16.vlgmr.msra.gmra.mrb[28].mxu1 %vm2154_vm1, %v4098_v38  ;;  %3232 = vmatmul.mubr.msk.bf16.vlgmr.msra.gmra.mrb[32].mxu0 %vm2154_vm1, %v4098_v38 }
 0x439   :  { %2528 = vmatpush1.bf16.msra.mxu1 %v3652_v40  ;;  %2651 = vmatpush1.bf16.msra.mxu0 %v3655_v41  ;;  %v3743_v40 = vld [vmem:[#allocation8 + $0x1b0] ss:$148 sps:$4 sm:$0xff]  }
 0x43a   :  { %2529 = vmatprep.subr.bf16.mxu1 %v3660_v42  ;;  %2652 = vmatprep.subr.bf16.mxu0 %v3663_v44  ;;  %v3748_v41 = vld [vmem:[#allocation8 + $0x2dc] ss:$148 sps:$4 sm:$0xff]   ;;  %v3751_v42 = vld [vmem:[#allocation8 + $0x404] ss:$148 sps:$4 sm:$0xff]   ;;  %v3749_v44 = vld [vmem:[#allocation8 + $0x400] ss:$148 sps:$4 sm:$0xff]  }
 0x43b   :  { %2559 = vmatprep.mubr.bf16.mxu1 %v3880_v27  ;;  %2682 = vmatprep.mubr.bf16.mxu0 %v3880_v27 }
 0x43d   :  { %2530 = vmatpush1.bf16.msra.mxu1 %v3658_v45  ;;  %2653 = vmatpush1.bf16.msra.mxu0 %v3661_v46  ;;  %v1225_v45 = vlaneseq }
 0x43e   :  { %2531 = vmatprep.subr.bf16.mxu1 %v3666_v47  ;;  %2654 = vmatprep.subr.bf16.mxu0 %v3669_v48 }
 0x43f   :  { %v1226_v46 = vshrl.u32 %v1225_v45, 7 }
 0x441   :  { %2532 = vmatpush1.bf16.msra.mxu1 %v3664_v49  ;;  %2655 = vmatpush1.bf16.msra.mxu0 %v3667_v50  ;;  %v4160_v47 = vsub.s32 0, %v1226_v46  ;;  %v4162_v48 = vsub.s32 4, %v1226_v46  ;;  %v4167_v49 = vsub.s32 1, %v1226_v46  ;;  %v4169_v50 = vsub.s32 5, %v1226_v46 }
 0x442   :  { %2533 = vmatprep.subr.bf16.mxu1 %v3672_v51  ;;  %2656 = vmatprep.subr.bf16.mxu0 %v3675_v52 }
 0x445   :  { %2534 = vmatpush1.bf16.msra.mxu1 %v3670_v53  ;;  %2657 = vmatpush1.bf16.msra.mxu0 %v3673_v54 }
 0x446   :  { %2609 = vmatprep.subr.bf16.mxu1 %v3678_v55  ;;  %2732 = vmatprep.subr.bf16.mxu0 %v3681_v56 }
 0x448   :  { %3231 = vmatmul.mubr.msk.bf16.vlgmr.msra.gmra.mrb[32].mxu1 %vm2154_vm1, %v4098_v38  ;;  %3234 = vmatmul.mubr.msk.bf16.vlgmr.msra.gmra.mrb[36].mxu0 %vm2154_vm1, %v4098_v38 }
 0x449   :  { %2610 = vmatpush1.bf16.msra.mxu1 %v3676_v57  ;;  %2733 = vmatpush1.bf16.msra.mxu0 %v3679_v58 }
 0x44a   :  { %2611 = vmatprep.subr.bf16.mxu1 %v3684_v59  ;;  %2734 = vmatprep.subr.bf16.mxu0 %v3687_v60 }
 0x44b   :  { %2641 = vmatprep.mubr.bf16.mxu1 %v3880_v27  ;;  %2764 = vmatprep.mubr.bf16.mxu0 %v3880_v27 }
 0x44d   :  { %2612 = vmatpush1.bf16.msra.mxu1 %v3682_v61  ;;  %2735 = vmatpush1.bf16.msra.mxu0 %v3685_v62 }
 0x44e   :  { %2613 = vmatprep.subr.bf16.mxu1 %v3690_v63  ;;  %2736 = vmatprep.subr.bf16.mxu0 %v3693_v0 }
 0x451   :  { %2614 = vmatpush1.bf16.msra.mxu1 %v3688_v1  ;;  %2737 = vmatpush1.bf16.msra.mxu0 %v3691_v2  ;;  %v4175_v2 = vsub.s32 2, %v1226_v46 }
 0x452   :  { %2615 = vmatprep.subr.bf16.mxu1 %v3696_v3  ;;  %2738 = vmatprep.subr.bf16.mxu0 %v3699_v4  ;;  %v4180_v3 = vld [vmem:[%s4281_s10 + $0x8] sm:$0xff]  ;;  %v4182_v4 = vsub.s32 3, %v1226_v46 }
 0x455   :  { %2616 = vmatpush1.bf16.msra.mxu1 %v3694_v5  ;;  %2739 = vmatpush1.bf16.msra.mxu0 %v3697_v6  ;;  %v1260_v6 = vrot.slane %v4180_v3, %v4160_v47 }
 0x456   :  { %2691 = vmatprep.subr.bf16.mxu1 %v3702_v7  ;;  %2814 = vmatprep.subr.bf16.mxu0 %v3705_v8  ;;  %v1264_v8 = vrot.slane %v4180_v3, %v4167_v49 }
 0x458   :  { %3233 = vmatmul.mubr.msk.bf16.vlgmr.msra.gmra.mrb[36].mxu1 %vm2154_vm1, %v4098_v38  ;;  %3236 = vmatmul.mubr.msk.bf16.vlgmr.msra.gmra.mrb[40].mxu0 %vm2154_vm1, %v4098_v38 }
 0x459   :  { %2692 = vmatpush1.bf16.msra.mxu1 %v3700_v9  ;;  %2815 = vmatpush1.bf16.msra.mxu0 %v3703_v10 }
 0x45a   :  { %2693 = vmatprep.subr.bf16.mxu1 %v3708_v11  ;;  %2816 = vmatprep.subr.bf16.mxu0 %v3711_v12 }
 0x45b   :  { %2723 = vmatprep.mubr.bf16.mxu1 %v3880_v27  ;;  %2846 = vmatprep.mubr.bf16.mxu0 %v3880_v27 }
 0x45d   :  { %2694 = vmatpush1.bf16.msra.mxu1 %v3706_v13  ;;  %2817 = vmatpush1.bf16.msra.mxu0 %v3709_v14 }
 0x45e   :  { %2695 = vmatprep.subr.bf16.mxu1 %v3714_v15  ;;  %2818 = vmatprep.subr.bf16.mxu0 %v3717_v16 }
 0x461   :  { %2696 = vmatpush1.bf16.msra.mxu1 %v3712_v17  ;;  %2819 = vmatpush1.bf16.msra.mxu0 %v3715_v18 }
 0x462   :  { %2697 = vmatprep.subr.bf16.mxu1 %v3720_v19  ;;  %2820 = vmatprep.subr.bf16.mxu0 %v3723_v20 }
 0x465   :  { %2698 = vmatpush1.bf16.msra.mxu1 %v3718_v21  ;;  %2821 = vmatpush1.bf16.msra.mxu0 %v3721_v22  ;;  %v4190_v21 = vsub.s32 6, %v1226_v46  ;;  %v4192_v22 = vsub.s32 7, %v1226_v46 }
 0x466   :  { %2773 = vmatprep.subr.bf16.mxu1 %v3726_v23  ;;  %3428 = vmatprep.subr.bf16.mxu0 %v3878_v43 }
 0x468   :  { %3235 = vmatmul.mubr.msk.bf16.vlgmr.msra.gmra.mrb[40].mxu1 %vm2154_vm1, %v4098_v38  ;;  %3238 = vmatmul.mubr.msk.bf16.vlgmr.msra.gmra.mrb[44].mxu0 %vm2154_vm1, %v4098_v38 }
 0x469   :  { %2774 = vmatpush1.bf16.msra.mxu1 %v3724_v24  ;;  %3429 = vmatpush3.bf16.msra.mxu0 %v3727_v25  ;;  %v1276_v24 = vrot.slane %v4180_v3, %v4162_v48 }
 0x46a   :  { %2775 = vmatprep.subr.bf16.mxu1 %v3730_v26  ;;  %3430 = vmatprep.subr.bf16.mxu0 %v3878_v43  ;;  %v1280_v26 = vrot.slane %v4180_v3, %v4169_v50 }
 0x46b   :  { %2805 = vmatprep.mubr.bf16.mxu1 %v3880_v27  ;;  %3436 = vmatprep.mubr.msk.bf16.mxu0 %vm3879_vm0, %v3878_v43 }
 0x46d   :  { %2776 = vmatpush1.bf16.msra.mxu1 %v3728_v28  ;;  %3431 = vmatpush3.bf16.msra.mxu0 %v3731_v29 }
 0x46e   :  { %2777 = vmatprep.subr.bf16.mxu1 %v3734_v30  ;;  %3432 = vmatprep.subr.bf16.mxu0 %v3878_v43 }
 0x471   :  { %2778 = vmatpush1.bf16.msra.mxu1 %v3732_v31  ;;  %3433 = vmatpush3.bf16.msra.mxu0 %v3735_v32 }
 0x472   :  { %2779 = vmatprep.subr.bf16.mxu1 %v3738_v33  ;;  %3434 = vmatprep.subr.bf16.mxu0 %v3878_v43  ;;  %v3746_v43 = vld [vmem:[#allocation8 + $0x2d8] ss:$148 sps:$4 sm:$0xff]  }
 0x475   :  { %2780 = vmatpush1.bf16.msra.mxu1 %v3736_v34  ;;  %3435 = vmatpush3.bf16.msra.mxu0 %v3739_v35 }
 0x476   :  { %2855 = vmatprep.subr.bf16.mxu1 %v3742_v36 }
 0x478   :  { %3237 = vmatmul.mubr.msk.bf16.vlgmr.msra.gmra.mrb[44].mxu1 %vm2154_vm1, %v4098_v38  ;;  %3437 = vmatmul.mubr.msk.bf16.vlgmr.msra.gmra.mrb[48].mxu0 %vm2154_vm1, %v4098_v38 }
 0x479   :  { %2856 = vmatpush1.bf16.msra.mxu1 %v3740_v37  ;;  %2887 = vmatprep.mubr.bf16.mxu1 %v3880_v27  ;;  %v1215_v27 = vld [vmem:[%s4281_s10] sm:$0xff] }
 0x47a   :  { %2857 = vmatprep.subr.bf16.mxu1 %v3745_v39  ;;  %v1228_v51 = vrot.slane %v1215_v27, %v4160_v47  ;;  %v1244_v52 = vrot.slane %v1215_v27, %v4162_v48  ;;  %v1248_v53 = vrot.slane %v1215_v27, %v4169_v50  ;;  %v1236_v5 = vrot.slane %v1215_v27, %v4175_v2 }
 0x47b   :  { %v1240_v7 = vrot.slane %v1215_v27, %v4182_v4  ;;  %v1252_v23 = vrot.slane %v1215_v27, %v4190_v21  ;;  %v1256_v25 = vrot.slane %v1215_v27, %v4192_v22 }
 0x47d   :  { %2858 = vmatpush1.bf16.msra.mxu1 %v3743_v40 }
 0x47e   :  { %2859 = vmatprep.subr.bf16.mxu1 %v3748_v41  ;;  %v4203_v41 = vld [vmem:[%s4281_s10 + $0x10] sm:$0xff] }
 0x47f   :  { %v1296_v45 = vrot.slane %v4203_v41, %v4167_v49 }
 0x481   :  { %2860 = vmatpush1.bf16.msra.mxu1 %v3746_v43  ;;  %v1268_v43 = vrot.slane %v4180_v3, %v4175_v2 }
 0x482   :  { %2861 = vmatprep.subr.bf16.mxu1 %v3751_v42  ;;  %v1292_v42 = vrot.slane %v4203_v41, %v4160_v47 }
 0x485   :  { %2862 = vmatpush1.bf16.msra.mxu1 %v3749_v44  ;;  %v1272_v44 = vrot.slane %v4180_v3, %v4182_v4 }
 0x488   :  { %3239 = vmatmul.mubr.msk.bf16.vlgmr.msra.gmra.mrb[48].mxu1 %vm2154_vm1, %v4098_v38  ;;  %v1232_v38 = vrot.slane %v1215_v27, %v4167_v49 }
 0x4cb   :  { %v2192_v54 = vpop.f32.mrb[12].mxu1  ;;  %v2274_v55 = vpop.f32.mrb[16].mxu0 }
 0x4cc   :  { %v2193_v56 = vadd.f32 %v2192_v54, %v1228_v51  ;;  %v2275_v57 = vadd.f32 %v2274_v55, %v1244_v52  ;;  %v2194_v58 = vpop.f32.mrb[13].mxu1  ;;  %v2276_v59 = vpop.f32.mrb[17].mxu0 }
 0x4cd   :  { %v2195_v60 = vadd.f32 %v2194_v58, %v1232_v38  ;;  %v2277_v61 = vadd.f32 %v2276_v59, %v1248_v53  ;;  %v2196_v62 = vpop.f32.mrb[14].mxu1  ;;  %v2278_v63 = vpop.f32.mrb[18].mxu0 }
 0x4ce   :  { %2936 = vst [vmem:[#allocation10] sm:$0xff] %v2193_v56  ;;  %2940 = vst [vmem:[#allocation10 + $0x20] sm:$0xff] %v2275_v57  ;;  %v2197_v0 = vpop.f32.mrb[15].mxu1  ;;  %v2279_v1 = vpop.f32.mrb[19].mxu0  ;;  %v1288_v62 = vrot.slane %v4180_v3, %v4192_v22  ;;  %v1312_v63 = vrot.slane %v4203_v41, %v4169_v50 }
 0x4cf   :  { %2937 = vst [vmem:[#allocation10 + $0x8] sm:$0xff] %v2195_v60  ;;  %2941 = vst [vmem:[#allocation10 + $0x28] sm:$0xff] %v2277_v61  ;;  %v1284_v60 = vrot.slane %v4180_v3, %v4190_v21  ;;  %v1308_v61 = vrot.slane %v4203_v41, %v4162_v48  ;;  %v4224_v3 = vld [vmem:[%s4281_s10 + $0x18] sm:$0xff] }
 0x4db   :  { %v2233_v9 = vpop.f32.mrb[16].mxu1  ;;  %v2356_v10 = vpop.f32.mrb[20].mxu0 }
 0x4dc   :  { %v2234_v11 = vadd.f32 %v2233_v9, %v1236_v5  ;;  %v2357_v12 = vadd.f32 %v2356_v10, %v1260_v6  ;;  %v2235_v13 = vpop.f32.mrb[17].mxu1  ;;  %v2358_v14 = vpop.f32.mrb[21].mxu0 }
 0x4dd   :  { %v2236_v15 = vadd.f32 %v2235_v13, %v1240_v7  ;;  %v2359_v16 = vadd.f32 %v2358_v14, %v1264_v8  ;;  %v2237_v17 = vpop.f32.mrb[18].mxu1  ;;  %v2360_v18 = vpop.f32.mrb[22].mxu0 }
 0x4de   :  { %2938 = vst [vmem:[#allocation10 + $0x10] sm:$0xff] %v2234_v11  ;;  %2944 = vst [vmem:[#allocation10 + $0x40] sm:$0xff] %v2357_v12  ;;  %v2238_v19 = vpop.f32.mrb[19].mxu1  ;;  %v2361_v20 = vpop.f32.mrb[23].mxu0  ;;  %v1304_v17 = vrot.slane %v4203_v41, %v4182_v4  ;;  %v1328_v18 = vrot.slane %v4224_v3, %v4167_v49 }
 0x4df   :  { %2939 = vst [vmem:[#allocation10 + $0x18] sm:$0xff] %v2236_v15  ;;  %2945 = vst [vmem:[#allocation10 + $0x48] sm:$0xff] %v2359_v16  ;;  %v1300_v15 = vrot.slane %v4203_v41, %v4175_v2  ;;  %v1324_v16 = vrot.slane %v4224_v3, %v4160_v47 }
 0x4eb   :  { %v2315_v28 = vpop.f32.mrb[20].mxu1  ;;  %v2438_v29 = vpop.f32.mrb[24].mxu0 }
 0x4ec   :  { %v2316_v30 = vadd.f32 %v2315_v28, %v1252_v23  ;;  %v2439_v31 = vadd.f32 %v2438_v29, %v1276_v24  ;;  %v2317_v32 = vpop.f32.mrb[21].mxu1  ;;  %v2440_v33 = vpop.f32.mrb[25].mxu0 }
 0x4ed   :  { %v2318_v34 = vadd.f32 %v2317_v32, %v1256_v25  ;;  %v2441_v35 = vadd.f32 %v2440_v33, %v1280_v26  ;;  %v2319_v36 = vpop.f32.mrb[22].mxu1  ;;  %v2442_v37 = vpop.f32.mrb[26].mxu0 }
 0x4ee   :  { %2942 = vst [vmem:[#allocation10 + $0x30] sm:$0xff] %v2316_v30  ;;  %2948 = vst [vmem:[#allocation10 + $0x60] sm:$0xff] %v2439_v31  ;;  %v2320_v39 = vpop.f32.mrb[23].mxu1  ;;  %v2443_v40 = vpop.f32.mrb[27].mxu0  ;;  %v1320_v36 = vrot.slane %v4203_v41, %v4192_v22  ;;  %v1344_v37 = vrot.slane %v4224_v3, %v4169_v50  ;;  %v1219_v50 = vld [vmem:[%s4281_s10 + $0x20] sm:$0x1f] }
 0x4ef   :  { %2943 = vst [vmem:[#allocation10 + $0x38] sm:$0xff] %v2318_v34  ;;  %2949 = vst [vmem:[#allocation10 + $0x68] sm:$0xff] %v2441_v35  ;;  %v1316_v34 = vrot.slane %v4203_v41, %v4190_v21  ;;  %v1340_v35 = vrot.slane %v4224_v3, %v4162_v48  ;;  %v1332_v41 = vrot.slane %v4224_v3, %v4175_v2  ;;  %s3881_s10 = smov [#allocation10]  }
 0x4f0   :  { %s2979_s5 = sshll.u32 %s3881_s10, 4  ;;  %s2980_s5 = int_to_ptr.vmem [resolvable:$true] %s2979_s5 }
 0x4f1   :  { %s3840_s27 = scalar_lea.vmem %s2980_s5, 4736  ;;  %p3845_p5 = scmp.lt.s32.totalorder %s2980_s5, %s2980_s5 }
 0x4f2   :  { %p3841_p4 = scmp.ne.s32.totalorder %s2980_s5, %s3840_s27  ;;  %p3846_p6 = scmp.lt.s32.totalorder %s3840_s27, %s3840_s27 }
 0x4f4   :  { %p3847_p7 = por %p3846_p6, %p3845_p5 }
 0x4f6   :  { %p3848_p8 = pnand %p3847_p7, %p3841_p4 }
 0x4fb   :  { %v2397_v46 = vpop.f32.mrb[24].mxu1  ;;  %v2520_v27 = vpop.f32.mrb[28].mxu0 }
 0x4fc   :  { %v2398_v51 = vadd.f32 %v2397_v46, %v1268_v43  ;;  %v2521_v52 = vadd.f32 %v2520_v27, %v1292_v42  ;;  %v2399_v38 = vpop.f32.mrb[25].mxu1  ;;  %v2522_v53 = vpop.f32.mrb[29].mxu0 }
 0x4fd   :  { %v2400_v54 = vadd.f32 %v2399_v38, %v1272_v44  ;;  %v2523_v55 = vadd.f32 %v2522_v53, %v1296_v45  ;;  %v2401_v56 = vpop.f32.mrb[26].mxu1  ;;  %v2524_v57 = vpop.f32.mrb[30].mxu0 }
 0x4fe   :  { %2946 = vst [vmem:[#allocation10 + $0x50] sm:$0xff] %v2398_v51  ;;  %2952 = vst [vmem:[#allocation10 + $0x80] sm:$0xff] %v2521_v52  ;;  %v2402_v58 = vpop.f32.mrb[27].mxu1  ;;  %v2525_v59 = vpop.f32.mrb[31].mxu0  ;;  %v1360_v56 = vrot.slane %v1219_v50, %v4167_v49  ;;  %v1372_v49 = vrot.slane %v1219_v50, %v4162_v48  ;;  %v1364_v48 = vrot.slane %v1219_v50, %v4175_v2 }
 0x4ff   :  { %2947 = vst [vmem:[#allocation10 + $0x58] sm:$0xff] %v2400_v54  ;;  %2953 = vst [vmem:[#allocation10 + $0x88] sm:$0xff] %v2523_v55  ;;  %v1356_v54 = vrot.slane %v1219_v50, %v4160_v47  ;;  %v1336_v55 = vrot.slane %v4224_v3, %v4182_v4  ;;  %v1348_v47 = vrot.slane %v4224_v3, %v4190_v21 }
 0x500   :  { %v1368_v21 = vrot.slane %v1219_v50, %v4182_v4 }
 0x50b   :  { %v2479_v0 = vpop.f32.mrb[28].mxu1  ;;  %v2602_v1 = vpop.f32.mrb[32].mxu0 }
 0x50c   :  { %v2480_v5 = vadd.f32 %v2479_v0, %v1284_v60  ;;  %v2603_v6 = vadd.f32 %v2602_v1, %v1308_v61  ;;  %v2481_v7 = vpop.f32.mrb[29].mxu1  ;;  %v2604_v8 = vpop.f32.mrb[33].mxu0 }
 0x50d   :  { %v2482_v9 = vadd.f32 %v2481_v7, %v1288_v62  ;;  %v2605_v10 = vadd.f32 %v2604_v8, %v1312_v63  ;;  %v2483_v11 = vpop.f32.mrb[30].mxu1  ;;  %v2606_v12 = vpop.f32.mrb[34].mxu0  ;;  %v1352_v8 = vrot.slane %v4224_v3, %v4192_v22 }
 0x50e   :  { %2950 = vst [vmem:[#allocation10 + $0x70] sm:$0xff] %v2480_v5  ;;  %2956 = vst [vmem:[#allocation10 + $0xa0] sm:$0xff] %v2603_v6  ;;  %v2484_v13 = vpop.f32.mrb[31].mxu1  ;;  %v2607_v14 = vpop.f32.mrb[35].mxu0 }
 0x50f   :  { %2951 = vst [vmem:[#allocation10 + $0x78] sm:$0xff] %v2482_v9  ;;  %2957 = vst [vmem:[#allocation10 + $0xa8] sm:$0xff] %v2605_v10 }
 0x51b   :  { %v2561_v19 = vpop.f32.mrb[32].mxu1  ;;  %v2684_v20 = vpop.f32.mrb[36].mxu0 }
 0x51c   :  { %v2562_v23 = vadd.f32 %v2561_v19, %v1300_v15  ;;  %v2685_v24 = vadd.f32 %v2684_v20, %v1324_v16  ;;  %v2563_v25 = vpop.f32.mrb[33].mxu1  ;;  %v2686_v26 = vpop.f32.mrb[37].mxu0 }
 0x51d   :  { %v2564_v28 = vadd.f32 %v2563_v25, %v1304_v17  ;;  %v2687_v29 = vadd.f32 %v2686_v26, %v1328_v18  ;;  %v2565_v30 = vpop.f32.mrb[34].mxu1  ;;  %v2688_v31 = vpop.f32.mrb[38].mxu0 }
 0x51e   :  { %2954 = vst [vmem:[#allocation10 + $0x90] sm:$0xff] %v2562_v23  ;;  %2960 = vst [vmem:[#allocation10 + $0xc0] sm:$0xff] %v2685_v24  ;;  %v2566_v32 = vpop.f32.mrb[35].mxu1  ;;  %v2689_v33 = vpop.f32.mrb[39].mxu0 }
 0x51f   :  { %2955 = vst [vmem:[#allocation10 + $0x98] sm:$0xff] %v2564_v28  ;;  %2961 = vst [vmem:[#allocation10 + $0xc8] sm:$0xff] %v2687_v29 }
 0x52b   :  { %v2643_v39 = vpop.f32.mrb[36].mxu1  ;;  %v2766_v40 = vpop.f32.mrb[40].mxu0 }
 0x52c   :  { %v2644_v43 = vadd.f32 %v2643_v39, %v1316_v34  ;;  %v2767_v42 = vadd.f32 %v2766_v40, %v1340_v35  ;;  %v2645_v44 = vpop.f32.mrb[37].mxu1  ;;  %v2768_v45 = vpop.f32.mrb[41].mxu0 }
 0x52d   :  { %v2646_v46 = vadd.f32 %v2645_v44, %v1320_v36  ;;  %v2769_v27 = vadd.f32 %v2768_v45, %v1344_v37  ;;  %v2647_v51 = vpop.f32.mrb[38].mxu1  ;;  %v2770_v52 = vpop.f32.mrb[42].mxu0 }
 0x52e   :  { %2958 = vst [vmem:[#allocation10 + $0xb0] sm:$0xff] %v2644_v43  ;;  %2964 = vst [vmem:[#allocation10 + $0xe0] sm:$0xff] %v2767_v42  ;;  %v2648_v38 = vpop.f32.mrb[39].mxu1  ;;  %v2771_v53 = vpop.f32.mrb[43].mxu0 }
 0x52f   :  { %2959 = vst [vmem:[#allocation10 + $0xb8] sm:$0xff] %v2646_v46  ;;  %2965 = vst [vmem:[#allocation10 + $0xe8] sm:$0xff] %v2769_v27 }
 0x53b   :  { %v2725_v57 = vpop.f32.mrb[40].mxu1  ;;  %v2848_v58 = vpop.f32.mrb[44].mxu0 }
 0x53c   :  { %v2726_v59 = vadd.f32 %v2725_v57, %v1332_v41  ;;  %v2849_v60 = vadd.f32 %v2848_v58, %v1356_v54  ;;  %v2727_v61 = vpop.f32.mrb[41].mxu1  ;;  %v2850_v62 = vpop.f32.mrb[45].mxu0 }
 0x53d   :  { %v2728_v63 = vadd.f32 %v2727_v61, %v1336_v55  ;;  %v2851_v0 = vadd.f32 %v2850_v62, %v1360_v56  ;;  %v2729_v1 = vpop.f32.mrb[42].mxu1  ;;  %v2852_v5 = vpop.f32.mrb[46].mxu0 }
 0x53e   :  { %2962 = vst [vmem:[#allocation10 + $0xd0] sm:$0xff] %v2726_v59  ;;  %2968 = vst [vmem:[#allocation10 + $0x100] sm:$0xff] %v2849_v60  ;;  %v2730_v6 = vpop.f32.mrb[43].mxu1  ;;  %v2853_v7 = vpop.f32.mrb[47].mxu0 }
 0x53f   :  { %2963 = vst [vmem:[#allocation10 + $0xd8] sm:$0xff] %v2728_v63  ;;  %2969 = vst [vmem:[#allocation10 + $0x108] sm:$0xff] %v2851_v0 }
 0x54b   :  { %v2807_v9 = vpop.f32.mrb[44].mxu1  ;;  %v2930_v10 = vpop.f32.mrb[48].mxu0 }
 0x54c   :  { %v2808_v11 = vadd.f32 %v2807_v9, %v1348_v47  ;;  %v2931_v12 = vadd.f32 %v2930_v10, %v1372_v49  ;;  %v2809_v13 = vpop.f32.mrb[45].mxu1  ;;  %v3438_v14 = vpop.f32.mrb[49].mxu0 }
 0x54d   :  { %v2810_v15 = vadd.f32 %v2809_v13, %v1352_v8  ;;  %v2811_v16 = vpop.f32.mrb[46].mxu1  ;;  %v2933_v17 = vpop.f32.mrb[50].mxu0 }
 0x54e   :  { %2966 = vst [vmem:[#allocation10 + $0xf0] sm:$0xff] %v2808_v11  ;;  %2972 = vst.msk [vmem:[#allocation10 + $0x120] sm:$0xff] %vm2154_vm1, %v2931_v12  ;;  %v2812_v18 = vpop.f32.mrb[47].mxu1  ;;  %v3439_v19 = vpop.f32.mrb[51].mxu0 }
 0x54f   :  { %2967 = vst [vmem:[#allocation10 + $0xf8] sm:$0xff] %v2810_v15 }
 0x55b   :  { %v2889_v22 = vpop.f32.mrb[48].mxu1 }
 0x55c   :  { %v2890_v3 = vadd.f32 %v2889_v22, %v1364_v48  ;;  %v2891_v20 = vpop.f32.mrb[49].mxu1 }
 0x55d   :  { %v2892_v23 = vadd.f32 %v2891_v20, %v1368_v21  ;;  %v2893_v24 = vpop.f32.mrb[50].mxu1 }
 0x55e   :  { %2970 = vst [vmem:[#allocation10 + $0x110] sm:$0xff] %v2890_v3  ;;  %v2894_v25 = vpop.f32.mrb[51].mxu1 }
 0x55f   :  { %2971 = vst [vmem:[#allocation10 + $0x118] sm:$0xff] %v2892_v23 }
 0x560   :  { %3851 = shalt.err (!%p3848_p8)
}
 0x561   :  { %s3852_s9 = scalar_lea.hbm %s4282_s11, 4736 }
 0x562   :  { %p3853_p9 = scmp.ne.s32.totalorder %s4282_s11, %s3852_s9  ;;  %p3856_p10 = scmp.lt.u32.totalorder %s3852_s9, %s4282_s11 }
 0x564   :  { %p3858_p11 = pnand %p3856_p10, %p3853_p9 }
 0x566   :  { %3861 = shalt.err (!%p3858_p11)
}
 0x567   :  { %2982 = dma.vmem_to_hbm [thread:$0]  %s2980_s5, 4736, %s4282_s11, [#allocation4]  }
 0x568   :  { %3868 = dma.done.wait [#allocation4], 4736  }
 0x569   :  { %3869 = vsyncadd [#allocation4], 4294962560 }
 0x56a   :  { %2986 = vsyncpa [#allocation3], 1 }
 0x56b   :  { %2987 = vsyncpa [#allocation6], 1 }
 0x56c   :  { %2988 = vsyncpa [#allocation9], 1 }
 0x56d   :  { %2989 = vsyncpa [#allocation4], 1 }

</bundles_post_ra>
